<compile_context>
chip_gen: v7x
topology: tpu7x:2x2x1
jax: 0.10.0
libtpu: 0.0.40
codegen_flags: <defaults>
</compile_context>

<pallas_src>
import functools
import math

import jax
import jax.numpy as jnp
from jax import lax
from jax.experimental import pallas as pl
from jax.experimental.pallas import tpu as pltpu


# ----------------------------------------------------------------------------
# In-kernel helper: KxK conv as a single im2col matmul on the MXU.
# ----------------------------------------------------------------------------
def _conv_im2col(src_ref, w_ref, *, K, Ho, Wo, stride):
    """src_ref: f32 VMEM scratch holding the zero-padded input (Hp, Wp, Cin).
    w_ref:   bf16 weight reshaped to (K*K*Cin, Cout).
    Returns the f32 (Ho*Wo, Cout) convolution result (stride applied)."""
    cin = src_ref.shape[-1]
    taps = []
    for kh in range(K):
        for kw in range(K):
            if stride == 1:
                p = src_ref[pl.ds(kh, Ho), pl.ds(kw, Wo), :]
            else:
                p = src_ref[pl.ds(kh, Ho, stride=stride),
                            pl.ds(kw, Wo, stride=stride), :]
            taps.append(p.reshape(Ho * Wo, cin))
    # im2col slab: contraction depth K*K*Cin instead of K*K tiny matmuls.
    slab = jnp.concatenate(taps, axis=-1).astype(jnp.bfloat16)
    return jnp.dot(slab, w_ref[...], preferred_element_type=jnp.float32)


# ----------------------------------------------------------------------------
# Kernel 1: plain conv + folded-BN (+ optional ReLU)  -- used for the gate.
# ----------------------------------------------------------------------------
def _conv_bn_kernel(x_ref, w_ref, s_ref, b_ref, o_ref, xpad_ref,
                    *, K, H, W, relu):
    pad = K // 2
    cout = o_ref.shape[-1]
    # in-kernel zero padding (no wrapper-side jnp.pad)
    xpad_ref[...] = jnp.zeros_like(xpad_ref)
    xpad_ref[pad:pad + H, pad:pad + W, :] = x_ref[0].astype(xpad_ref.dtype)

    y = _conv_im2col(xpad_ref, w_ref, K=K, Ho=H, Wo=W, stride=1)
    y = y * s_ref[...] + b_ref[...]
    if relu:
        y = jnp.maximum(y, 0.0)
    o_ref[0] = y.reshape(H, W, cout).astype(o_ref.dtype)


# ----------------------------------------------------------------------------
# Kernel 2: a whole ResidualBlock fused into one kernel:
#   conv1(stride s)+BN+ReLU -> conv2+BN -> (+ 1x1 shortcut conv+BN) -> add.
# Intermediates stay in VMEM scratch; only the block output hits HBM.
# ----------------------------------------------------------------------------
def _residual_block_kernel(x_ref, w1_ref, s1_ref, b1_ref,
                           w2_ref, s2_ref, b2_ref, *rest,
                           K, H, W, stride, has_shortcut):
    if has_shortcut:
        wsc_ref, ssc_ref, bsc_ref, o_ref, xpad_ref, hpad_ref = rest
    else:
        o_ref, xpad_ref, hpad_ref = rest

    pad = K // 2
    Ho, Wo = H // stride, W // stride
    cout = o_ref.shape[-1]

    # ---- in-kernel zero padding of the block input
    xpad_ref[...] = jnp.zeros_like(xpad_ref)
    xpad_ref[pad:pad + H, pad:pad + W, :] = x_ref[0].astype(xpad_ref.dtype)

    # ---- conv1 (stride s) + BN + ReLU : one im2col matmul, strided windows
    h = _conv_im2col(xpad_ref, w1_ref, K=K, Ho=Ho, Wo=Wo, stride=stride)
    h = jnp.maximum(h * s1_ref[...] + b1_ref[...], 0.0)

    # ---- stage conv1 output zero-padded in VMEM for conv2 (no HBM round trip)
    hpad_ref[...] = jnp.zeros_like(hpad_ref)
    hpad_ref[pad:pad + Ho, pad:pad + Wo, :] = h.reshape(Ho, Wo, cout)

    # ---- conv2 (stride 1) + BN
    y = _conv_im2col(hpad_ref, w2_ref, K=K, Ho=Ho, Wo=Wo, stride=1)
    y = y * s2_ref[...] + b2_ref[...]

    # ---- residual path: strided read of the (padded) input, all in VMEM
    if stride == 1:
        xr = xpad_ref[pl.ds(pad, Ho), pl.ds(pad, Wo), :]
    else:
        xr = xpad_ref[pl.ds(pad, Ho, stride=stride),
                      pl.ds(pad, Wo, stride=stride), :]
    xr = xr.reshape(Ho * Wo, xr.shape[-1])
    if has_shortcut:
        r = jnp.dot(xr.astype(jnp.bfloat16), wsc_ref[...],
                    preferred_element_type=jnp.float32)
        r = r * ssc_ref[...] + bsc_ref[...]
    else:
        r = xr  # f32, channels already match (no-shortcut blocks have ds == 1)

    o_ref[0] = (y + r).reshape(Ho, Wo, cout).astype(o_ref.dtype)


# ----------------------------------------------------------------------------
# Wrappers (grid over batch, "parallel" for megacore).
# ----------------------------------------------------------------------------
def pallas_conv_bn(x, p, *, relu=False):
    """x: (N, H, W, Cin) bf16. 3x3 stride-1 pad-1 conv + folded BN (+ReLU)."""
    N, H, W, Cin = x.shape
    K = 3
    Cout = p["scale"].shape[-1]
    w = p["w"].reshape(K * K * Cin, Cout).astype(jnp.bfloat16)
    scale = p["scale"].reshape(1, Cout)
    bias = p["bias"].reshape(1, Cout)

    kernel = functools.partial(_conv_bn_kernel, K=K, H=H, W=W, relu=relu)
    return pl.pallas_call(
        kernel,
        out_shape=jax.ShapeDtypeStruct((N, H, W, Cout), jnp.bfloat16),
        grid=(N,),
        in_specs=[
            pl.BlockSpec((1, H, W, Cin), lambda n: (n, 0, 0, 0)),
            pl.BlockSpec((K * K * Cin, Cout), lambda n: (0, 0)),
            pl.BlockSpec((1, Cout), lambda n: (0, 0)),
            pl.BlockSpec((1, Cout), lambda n: (0, 0)),
        ],
        out_specs=pl.BlockSpec((1, H, W, Cout), lambda n: (n, 0, 0, 0)),
        scratch_shapes=[pltpu.VMEM((H + 2, W + 2, Cin), jnp.float32)],
        compiler_params=pltpu.CompilerParams(
            dimension_semantics=("parallel",)),
    )(x, w, scale, bias)


def pallas_residual_block(x, blk):
    """x: (N, H, W, Cin) bf16. Whole ResidualBlock fused in one pallas_call."""
    N, H, W, Cin = x.shape
    K = 3
    ds = blk["ds"]
    Cout = blk["conv1"]["scale"].shape[-1]
    Ho, Wo = H // ds, W // ds
    has_sc = "shortcut" in blk

    w1 = blk["conv1"]["w"].reshape(K * K * Cin, Cout).astype(jnp.bfloat16)
    s1 = blk["conv1"]["scale"].reshape(1, Cout)
    b1 = blk["conv1"]["bias"].reshape(1, Cout)
    w2 = blk["conv2"]["w"].reshape(K * K * Cout, Cout).astype(jnp.bfloat16)
    s2 = blk["conv2"]["scale"].reshape(1, Cout)
    b2 = blk["conv2"]["bias"].reshape(1, Cout)

    args = [x, w1, s1, b1, w2, s2, b2]
    in_specs = [
        pl.BlockSpec((1, H, W, Cin), lambda n: (n, 0, 0, 0)),
        pl.BlockSpec((K * K * Cin, Cout), lambda n: (0, 0)),
        pl.BlockSpec((1, Cout), lambda n: (0, 0)),
        pl.BlockSpec((1, Cout), lambda n: (0, 0)),
        pl.BlockSpec((K * K * Cout, Cout), lambda n: (0, 0)),
        pl.BlockSpec((1, Cout), lambda n: (0, 0)),
        pl.BlockSpec((1, Cout), lambda n: (0, 0)),
    ]
    if has_sc:
        wsc = blk["shortcut"]["w"].reshape(Cin, Cout).astype(jnp.bfloat16)
        ssc = blk["shortcut"]["scale"].reshape(1, Cout)
        bsc = blk["shortcut"]["bias"].reshape(1, Cout)
        args += [wsc, ssc, bsc]
        in_specs += [
            pl.BlockSpec((Cin, Cout), lambda n: (0, 0)),
            pl.BlockSpec((1, Cout), lambda n: (0, 0)),
            pl.BlockSpec((1, Cout), lambda n: (0, 0)),
        ]

    kernel = functools.partial(_residual_block_kernel, K=K, H=H, W=W,
                               stride=ds, has_shortcut=has_sc)
    return pl.pallas_call(
        kernel,
        out_shape=jax.ShapeDtypeStruct((N, Ho, Wo, Cout), jnp.bfloat16),
        grid=(N,),
        in_specs=in_specs,
        out_specs=pl.BlockSpec((1, Ho, Wo, Cout), lambda n: (n, 0, 0, 0)),
        scratch_shapes=[
            pltpu.VMEM((H + 2, W + 2, Cin), jnp.float32),    # padded input
            pltpu.VMEM((Ho + 2, Wo + 2, Cout), jnp.float32),  # padded conv1 out
        ],
        compiler_params=pltpu.CompilerParams(
            dimension_semantics=("parallel",)),
    )(*args)


# ----------------------------------------------------------------------------
# Deterministic parameter init (conv weight + folded eval-mode BatchNorm).
# ----------------------------------------------------------------------------
def init_conv_bn(key, cin, cout, k):
    kw, kg, kb, km, kv = jax.random.split(key, 5)
    w = jax.random.normal(kw, (k, k, cin, cout), jnp.float32) / math.sqrt(k * k * cin)
    gamma = 1.0 + 0.1 * jax.random.normal(kg, (cout,), jnp.float32)
    beta = 0.1 * jax.random.normal(kb, (cout,), jnp.float32)
    mean = 0.1 * jax.random.normal(km, (cout,), jnp.float32)
    var = jnp.abs(jax.random.normal(kv, (cout,), jnp.float32)) + 0.5
    eps = 1e-5
    scale = gamma / jnp.sqrt(var + eps)
    bias = beta - mean * scale
    return {"w": w, "scale": scale, "bias": bias}


def init_encoder_params(key, in_channels, blocks_sizes, depths):
    params = {}
    key, kg = jax.random.split(key)
    # gate (resolution <= 64 branch): 3x3 stride-1 conv + BN (no ReLU/pool)
    params["gate"] = init_conv_bn(kg, in_channels, blocks_sizes[0], 3)

    layer_cfg = [(blocks_sizes[0], blocks_sizes[0], depths[0])] + [
        (ci, co, n)
        for (ci, co), n in zip(zip(blocks_sizes, blocks_sizes[1:]), depths[1:])
    ]
    layers = []
    for cin, cout, n in layer_cfg:
        downsampling = 2 if cin != cout else 1
        blocks = []
        for bi in range(n):
            b_cin = cin if bi == 0 else cout
            b_ds = downsampling if bi == 0 else 1
            key, k1, k2, k3 = jax.random.split(key, 4)
            blk = {
                "ds": b_ds,
                "conv1": init_conv_bn(k1, b_cin, cout, 3),
                "conv2": init_conv_bn(k2, cout, cout, 3),
            }
            if b_cin != cout:  # should_apply_shortcut
                blk["shortcut"] = init_conv_bn(k3, b_cin, cout, 1)
            blocks.append(blk)
        layers.append(blocks)
    params["layers"] = layers
    return params


# ----------------------------------------------------------------------------
# ResNetEncoder forward (Pallas).
# ----------------------------------------------------------------------------
def resnet_encoder_forward(x_nchw, params):
    x = jnp.transpose(x_nchw, (0, 2, 3, 1)).astype(jnp.bfloat16)  # NCHW->NHWC
    x = pallas_conv_bn(x, params["gate"], relu=False)             # gate
    for layer in params["layers"]:
        for blk in layer:
            x = pallas_residual_block(x, blk)
    return jnp.transpose(x, (0, 3, 1, 2)).astype(jnp.float32)     # NHWC->NCHW


# ----------------------------------------------------------------------------
# Pure-JAX reference (mirrors the kernel's bf16-matmul / f32-epilogue points
# so the comparison is tight; remaining diffs are bf16 ULP rounding flips at
# block boundaries).
# ----------------------------------------------------------------------------
def _ref_conv_bn(x, p, *, stride, pad):
    y = lax.conv_general_dilated(
        x.astype(jnp.bfloat16), p["w"].astype(jnp.bfloat16),
        (stride, stride), [(pad, pad), (pad, pad)],
        dimension_numbers=("NHWC", "HWIO", "NHWC"),
        preferred_element_type=jnp.float32)
    return y * p["scale"][None, None, None, :] + p["bias"][None, None, None, :]


def reference_forward(x_nchw, params):
    x = jnp.transpose(x_nchw, (0, 2, 3, 1)).astype(jnp.bfloat16)
    x = _ref_conv_bn(x, params["gate"], stride=1, pad=1).astype(jnp.bfloat16)
    for layer in params["layers"]:
        for blk in layer:
            ds = blk["ds"]
            if "shortcut" in blk:
                r = _ref_conv_bn(x, blk["shortcut"], stride=ds, pad=0)
            else:
                r = x.astype(jnp.float32)
            h = jnp.maximum(_ref_conv_bn(x, blk["conv1"], stride=ds, pad=1), 0.0)
            y = _ref_conv_bn(h, blk["conv2"], stride=1, pad=1)
            x = (y + r).astype(jnp.bfloat16)
    return jnp.transpose(x, (0, 3, 1, 2)).astype(jnp.float32)


if __name__ == "__main__":
    key = jax.random.PRNGKey(0)
    kx, kp = jax.random.split(key)

    # Small, module-consistent config (resolution<=64 gate path).
    N, C, H, W = 2, 4, 16, 16
    blocks_sizes = [8, 16, 16, 32]
    depths = [2, 1, 1, 1]

    x = jax.random.normal(kx, (N, C, H, W), jnp.float32)
    params = init_encoder_params(kp, C, blocks_sizes, depths)

    out = resnet_encoder_forward(x, params)
    out = jax.block_until_ready(out)

    # spatial: 16 (gate) -> 16 -> 8 -> 8 -> 4 ; channels -> 32
    assert out.shape == (N, blocks_sizes[-1], H // 4, W // 4), out.shape
    assert bool(jnp.all(jnp.isfinite(out)))

    ref = jax.block_until_ready(reference_forward(x, params))
    max_err = float(jnp.max(jnp.abs(out - ref)))
    # bf16 activations at block boundaries -> allow a few bf16 ULPs of drift.
    assert jnp.allclose(out, ref, rtol=2e-2, atol=2e-2), max_err

    print("KERNEL_OK")
</pallas_src>

<mosaic_0001>
module attributes {stable_mosaic.version = 11 : i64} {
  func.func @_conv_bn_kernel(%arg0: i32, %arg1: memref<1x16x16x4xbf16, #tpu.memory_space<vmem>>, %arg2: memref<36x8xbf16, #tpu.memory_space<vmem>>, %arg3: memref<1x8xf32, #tpu.memory_space<vmem>>, %arg4: memref<1x8xf32, #tpu.memory_space<vmem>>, %arg5: memref<1x16x16x8xbf16, #tpu.memory_space<vmem>>, %arg6: memref<18x18x4xf32, #tpu.memory_space<vmem>>) attributes {dimension_semantics = [#tpu.dimension_semantics<parallel>], iteration_bounds = array<i64: 2>, scalar_prefetch = 0 : i64, scratch_operands = 1 : i64, tpu.core_type = #tpu.core_type<tc>, window_params = [{transform_indices = @transform_0, window_bounds = array<i64: 1, 16, 16, 4>}, {pipeline_mode = #tpu.pipeline_mode<synchronous>, transform_indices = @transform_1, window_bounds = array<i64: 36, 8>}, {pipeline_mode = #tpu.pipeline_mode<synchronous>, transform_indices = @transform_2, window_bounds = array<i64: 1, 8>}, {pipeline_mode = #tpu.pipeline_mode<synchronous>, transform_indices = @transform_3, window_bounds = array<i64: 1, 8>}, {transform_indices = @transform_4, window_bounds = array<i64: 1, 16, 16, 8>}]} {
    %cst = arith.constant 0.000000e+00 : f32
    %0 = vector.broadcast %cst : f32 to vector<18x18x4xf32>
    %c0 = arith.constant 0 : index
    %c0_0 = arith.constant 0 : index
    %c0_1 = arith.constant 0 : index
    %1 = vector.load %arg6[%c0, %c0_0, %c0_1] : memref<18x18x4xf32, #tpu.memory_space<vmem>>, vector<18x18x4xf32>
    tpu.vector_store %arg6[%c0, %c0_0, %c0_1], %0 {strides = array<i32>} : memref<18x18x4xf32, #tpu.memory_space<vmem>>, vector<18x18x4xf32>,
    %c0_2 = arith.constant 0 : index
    %c0_3 = arith.constant 0 : index
    %c0_4 = arith.constant 0 : index
    %c0_5 = arith.constant 0 : index
    %2 = vector.load %arg1[%c0_2, %c0_3, %c0_4, %c0_5] : memref<1x16x16x4xbf16, #tpu.memory_space<vmem>>, vector<1x16x16x4xbf16>
    %3 = vector.shape_cast %2 : vector<1x16x16x4xbf16> to vector<16x16x4xbf16>
    %4 = arith.extf %3 : vector<16x16x4xbf16> to vector<16x16x4xf32>
    %c1 = arith.constant 1 : index
    %c1_6 = arith.constant 1 : index
    %c0_7 = arith.constant 0 : index
    %5 = vector.load %arg6[%c1, %c1_6, %c0_7] : memref<18x18x4xf32, #tpu.memory_space<vmem>>, vector<16x16x4xf32>
    tpu.vector_store %arg6[%c1, %c1_6, %c0_7], %4 {strides = array<i32>} : memref<18x18x4xf32, #tpu.memory_space<vmem>>, vector<16x16x4xf32>,
    %c0_8 = arith.constant 0 : index
    %c0_9 = arith.constant 0 : index
    %c0_10 = arith.constant 0 : index
    %6 = vector.load %arg6[%c0_8, %c0_9, %c0_10] : memref<18x18x4xf32, #tpu.memory_space<vmem>>, vector<16x16x4xf32>
    %7 = vector.shape_cast %6 : vector<16x16x4xf32> to vector<256x4xf32>
    %c0_11 = arith.constant 0 : index
    %c1_12 = arith.constant 1 : index
    %c0_13 = arith.constant 0 : index
    %8 = vector.load %arg6[%c0_11, %c1_12, %c0_13] : memref<18x18x4xf32, #tpu.memory_space<vmem>>, vector<16x16x4xf32>
    %9 = vector.shape_cast %8 : vector<16x16x4xf32> to vector<256x4xf32>
    %c0_14 = arith.constant 0 : index
    %c2 = arith.constant 2 : index
    %c0_15 = arith.constant 0 : index
    %10 = vector.load %arg6[%c0_14, %c2, %c0_15] : memref<18x18x4xf32, #tpu.memory_space<vmem>>, vector<16x16x4xf32>
    %11 = vector.shape_cast %10 : vector<16x16x4xf32> to vector<256x4xf32>
    %c1_16 = arith.constant 1 : index
    %c0_17 = arith.constant 0 : index
    %c0_18 = arith.constant 0 : index
    %12 = vector.load %arg6[%c1_16, %c0_17, %c0_18] : memref<18x18x4xf32, #tpu.memory_space<vmem>>, vector<16x16x4xf32>
    %13 = vector.shape_cast %12 : vector<16x16x4xf32> to vector<256x4xf32>
    %c1_19 = arith.constant 1 : index
    %c1_20 = arith.constant 1 : index
    %c0_21 = arith.constant 0 : index
    %14 = vector.load %arg6[%c1_19, %c1_20, %c0_21] : memref<18x18x4xf32, #tpu.memory_space<vmem>>, vector<16x16x4xf32>
    %15 = vector.shape_cast %14 : vector<16x16x4xf32> to vector<256x4xf32>
    %c1_22 = arith.constant 1 : index
    %c2_23 = arith.constant 2 : index
    %c0_24 = arith.constant 0 : index
    %16 = vector.load %arg6[%c1_22, %c2_23, %c0_24] : memref<18x18x4xf32, #tpu.memory_space<vmem>>, vector<16x16x4xf32>
    %17 = vector.shape_cast %16 : vector<16x16x4xf32> to vector<256x4xf32>
    %c2_25 = arith.constant 2 : index
    %c0_26 = arith.constant 0 : index
    %c0_27 = arith.constant 0 : index
    %18 = vector.load %arg6[%c2_25, %c0_26, %c0_27] : memref<18x18x4xf32, #tpu.memory_space<vmem>>, vector<16x16x4xf32>
    %19 = vector.shape_cast %18 : vector<16x16x4xf32> to vector<256x4xf32>
    %c2_28 = arith.constant 2 : index
    %c1_29 = arith.constant 1 : index
    %c0_30 = arith.constant 0 : index
    %20 = vector.load %arg6[%c2_28, %c1_29, %c0_30] : memref<18x18x4xf32, #tpu.memory_space<vmem>>, vector<16x16x4xf32>
    %21 = vector.shape_cast %20 : vector<16x16x4xf32> to vector<256x4xf32>
    %c2_31 = arith.constant 2 : index
    %c2_32 = arith.constant 2 : index
    %c0_33 = arith.constant 0 : index
    %22 = vector.load %arg6[%c2_31, %c2_32, %c0_33] : memref<18x18x4xf32, #tpu.memory_space<vmem>>, vector<16x16x4xf32>
    %23 = vector.shape_cast %22 : vector<16x16x4xf32> to vector<256x4xf32>
    %24 = tpu.concatenate %7, %9, %11, %13, %15, %17, %19, %21, %23 in 1 : vector<256x4xf32>, vector<256x4xf32>, vector<256x4xf32>, vector<256x4xf32>, vector<256x4xf32>, vector<256x4xf32>, vector<256x4xf32>, vector<256x4xf32>, vector<256x4xf32> -> vector<256x36xf32>
    %25 = arith.truncf %24 : vector<256x36xf32> to vector<256x36xbf16>
    %c0_34 = arith.constant 0 : index
    %c0_35 = arith.constant 0 : index
    %26 = vector.load %arg2[%c0_34, %c0_35] : memref<36x8xbf16, #tpu.memory_space<vmem>>, vector<36x8xbf16>
    %cst_36 = arith.constant dense<0.000000e+00> : vector<256x8xf32>
    %27 = tpu.matmul %25, %26, %cst_36 {dimension_numbers = #tpu.dot_dimension_numbers<[1], [0], [0], [1], [0, 0, 1, 1], [], []>} : vector<256x36xbf16>, vector<36x8xbf16>, vector<256x8xf32> -> vector<256x8xf32>
    %c0_37 = arith.constant 0 : index
    %c0_38 = arith.constant 0 : index
    %28 = vector.load %arg3[%c0_37, %c0_38] : memref<1x8xf32, #tpu.memory_space<vmem>>, vector<1x8xf32>
    %29 = vector.broadcast %28 : vector<1x8xf32> to vector<256x8xf32>
    %30 = arith.mulf %27, %29 : vector<256x8xf32>
    %c0_39 = arith.constant 0 : index
    %c0_40 = arith.constant 0 : index
    %31 = vector.load %arg4[%c0_39, %c0_40] : memref<1x8xf32, #tpu.memory_space<vmem>>, vector<1x8xf32>
    %32 = vector.broadcast %31 : vector<1x8xf32> to vector<256x8xf32>
    %33 = arith.addf %30, %32 : vector<256x8xf32>
    %34 = vector.shape_cast %33 : vector<256x8xf32> to vector<16x16x8xf32>
    %35 = arith.truncf %34 : vector<16x16x8xf32> to vector<16x16x8xbf16>
    %c0_41 = arith.constant 0 : index
    %c0_42 = arith.constant 0 : index
    %c0_43 = arith.constant 0 : index
    %c0_44 = arith.constant 0 : index
    %36 = vector.load %arg5[%c0_41, %c0_42, %c0_43, %c0_44] : memref<1x16x16x8xbf16, #tpu.memory_space<vmem>>, vector<1x16x16x8xbf16>
    %37 = vector.shape_cast %36 : vector<1x16x16x8xbf16> to vector<16x16x8xbf16>
    %38 = vector.shape_cast %35 : vector<16x16x8xbf16> to vector<1x16x16x8xbf16>
    tpu.vector_store %arg5[%c0_41, %c0_42, %c0_43, %c0_44], %38 {strides = array<i32>} : memref<1x16x16x8xbf16, #tpu.memory_space<vmem>>, vector<1x16x16x8xbf16>,
    return
  }
  func.func @transform_0(%arg0: i32) -> (i32, i32, i32, i32) {
    %c0_i32 = arith.constant 0 : i32
    %c0_i32_0 = arith.constant 0 : i32
    %c0_i32_1 = arith.constant 0 : i32
    %c0_i32_2 = arith.constant 0 : i32
    return %arg0, %c0_i32, %c0_i32_0, %c0_i32_1 : i32, i32, i32, i32
  }
  func.func @transform_1(%arg0: i32) -> (i32, i32) {
    %c0_i32 = arith.constant 0 : i32
    %c0_i32_0 = arith.constant 0 : i32
    %c0_i32_1 = arith.constant 0 : i32
    return %c0_i32, %c0_i32_0 : i32, i32
  }
  func.func @transform_2(%arg0: i32) -> (i32, i32) {
    %c0_i32 = arith.constant 0 : i32
    %c0_i32_0 = arith.constant 0 : i32
    %c0_i32_1 = arith.constant 0 : i32
    return %c0_i32, %c0_i32_0 : i32, i32
  }
  func.func @transform_3(%arg0: i32) -> (i32, i32) {
    %c0_i32 = arith.constant 0 : i32
    %c0_i32_0 = arith.constant 0 : i32
    %c0_i32_1 = arith.constant 0 : i32
    return %c0_i32, %c0_i32_0 : i32, i32
  }
  func.func @transform_4(%arg0: i32) -> (i32, i32, i32, i32) {
    %c0_i32 = arith.constant 0 : i32
    %c0_i32_0 = arith.constant 0 : i32
    %c0_i32_1 = arith.constant 0 : i32
    %c0_i32_2 = arith.constant 0 : i32
    return %arg0, %c0_i32, %c0_i32_0, %c0_i32_1 : i32, i32, i32, i32
  }
}

</mosaic_0001>

<bundles_post_ra>
// kernel: tpu_custom_call.1
= control target key start
LH: loop header
LB: loop body
LE: loop exit
PB: predicated region body
PF: predicated region fallthrough
CT: control target
= control target key end

     0   :  { %s3423_s15 = smov 0   ;;  %s4781_s0 = inlined_call_operand.vmem [shape: bf16[2,16,16,4], index: 0, kind: input, shape index: {}]   ;;  %s4782_s1 = inlined_call_operand.vmem [shape: bf16[36,8], index: 1, kind: input, shape index: {}]   ;;  %s4783_s2 = inlined_call_operand.vmem [shape: f32[1,8], index: 2, kind: input, shape index: {}]   ;;  %s4784_s3 = inlined_call_operand.vmem [shape: f32[1,8], index: 3, kind: input, shape index: {}]   ;;  %s4785_s4 = inlined_call_operand.vmem [shape: bf16[2,16,16,8], index: 4, kind: output, shape index: {}]  }
   0x1 LB: > { %s2472_s16 = sadd.s32 4294967295, %s3387_s15   ;;  %p2476_p0 = scmp.ge.s32.totalorder %s3387_s15, 1  ;;  %s3387_s15 = sphi %s3423_s15, %s14_s15  }
   0x2   : > { %p162_p1 = scmp.lt.s32.totalorder %s3387_s15, 3 }
   0x4   : > { %p163_p2 = pnand %p2476_p0, %p162_p1 }
   0x6   : > { %166 = sbr.rel (%p163_p2) target bundleno = 645 (0x285), region = 36 }
   0xd   : > { %vm199_vm0 = vcmask 31744   ;;  %vm202_vm1 = vcmask 25600   ;;  %p3433_p3 = scmp.lt.s32.totalorder %s2472_s16, 1  ;;  %v3389_v0 = vmov 0.0   ;;  %s3390_s22 = smov 4   ;;  %vm2013_vm2 = vcmask 1041408  }
   0xe   : > { %200 = vst.msk [vmem:[#allocation2] sm:$0xff] %vm199_vm0, %v3389_v0  ;;  %201 = vst.msk [vmem:[#allocation2 + $0x8] sm:$0xff] %vm199_vm0, %v3389_v0  ;;  %s3391_s23 = smov 8   ;;  %s3392_s24 = smov 12   ;;  %vm1697_vm3 = vcmask 64512   ;;  %vm1730_vm4 = vcmask 97280  }
   0xf   : > { %203 = vst.msk [vmem:[#allocation2 + $0x10] sm:$0x3] %vm202_vm1, %v3389_v0  ;;  %206 = vst.msk [vmem:[#allocation2 + $0x28] sm:$0x3] %vm202_vm1, %v3389_v0  ;;  %s4886_s16 = smov (!%p3433_p3, %s2472_s16), 1  ;;  %s3393_s25 = smov 16  }
  0x10   : > { %204 = vst.msk [vmem:[#allocation2 + $0x18] sm:$0xff] %vm199_vm0, %v3389_v0  ;;  %205 = vst.msk [vmem:[#allocation2 + $0x20] sm:$0xff] %vm199_vm0, %v3389_v0  ;;  %s2536_s18 = sshll.u32 %s4886_s16, 7  ;;  %s3394_s26 = smov 20   ;;  %vm1763_vm5 = vcmask 130048   ;;  %vm1796_vm6 = vcmask 162816  }
  0x11   : > { %207 = vst.msk [vmem:[#allocation2 + $0x30] sm:$0xff] %vm199_vm0, %v3389_v0  ;;  %208 = vst.msk [vmem:[#allocation2 + $0x38] sm:$0xff] %vm199_vm0, %v3389_v0  ;;  %s3503_s21 = scalar_lea.vmem %s4781_s0, %s2536_s18  ;;  %s3395_s29 = smov 24   ;;  %vm1829_vm7 = vcmask 195584   ;;  %vm1862_vm8 = vcmask 228352   ;;  %vm1895_vm9 = vcmask 261120  }
  0x12   : > { %209 = vst.msk [vmem:[#allocation2 + $0x40] sm:$0x3] %vm202_vm1, %v3389_v0  ;;  %212 = vst.msk [vmem:[#allocation2 + $0x58] sm:$0x3] %vm202_vm1, %v3389_v0  ;;  %v2634_v1 = vld [vmem:[%s3503_s21 + $0x8] sm:$0xff]   ;;  %v2571_v2 = vld [vmem:[%s3503_s21] sm:$0xff]   ;;  %s4654_s19 = scalar_lea.vmem %s4785_s4, %s2536_s18 }
  0x13   : > { %210 = vst.msk [vmem:[#allocation2 + $0x48] sm:$0xff] %vm199_vm0, %v3389_v0  ;;  %211 = vst.msk [vmem:[#allocation2 + $0x50] sm:$0xff] %vm199_vm0, %v3389_v0  ;;  %v2635_v3 = vld [vmem:[%s3503_s21 + $0x10] sm:$0xff]   ;;  %v2576_v4 = vunpack.c.l.bf16 %v2634_v1  ;;  %v2577_v5 = vunpack.c.h.bf16 %v2634_v1  ;;  %v2572_v6 = vunpack.c.l.bf16 %v2571_v2  ;;  %v2573_v7 = vunpack.c.h.bf16 %v2571_v2  ;;  %v2636_v8 = vld [vmem:[%s3503_s21 + $0x18] sm:$0xff]   ;;  %s3396_s8 = smov 28   ;;  %s3397_s9 = smov 32  }
  0x14   : > { %213 = vst.msk [vmem:[#allocation2 + $0x60] sm:$0xff] %vm199_vm0, %v3389_v0  ;;  %214 = vst.msk [vmem:[#allocation2 + $0x68] sm:$0xff] %vm199_vm0, %v3389_v0  ;;  %v2637_v9 = vld [vmem:[%s3503_s21 + $0x20] sm:$0xff]   ;;  %v2638_v10 = vld [vmem:[%s3503_s21 + $0x28] sm:$0xff]   ;;  %v2580_v13 = vunpack.c.l.bf16 %v2635_v3  ;;  %v2581_v14 = vunpack.c.h.bf16 %v2635_v3  ;;  %v2584_v15 = vunpack.c.l.bf16 %v2636_v8  ;;  %v2585_v16 = vunpack.c.h.bf16 %v2636_v8 }
  0x15   : > { %215 = vst.msk [vmem:[#allocation2 + $0x70] sm:$0x3] %vm202_vm1, %v3389_v0  ;;  %218 = vst.msk [vmem:[#allocation2 + $0x88] sm:$0x3] %vm202_vm1, %v3389_v0  ;;  %v384_v11 = vld [vmem:[#allocation2 + $0x1] sm:$0xff]  ;;  %v2639_v17 = vld [vmem:[%s3503_s21 + $0x30] sm:$0xff]   ;;  %v2588_v19 = vunpack.c.l.bf16 %v2637_v9  ;;  %v2589_v20 = vunpack.c.h.bf16 %v2637_v9  ;;  %v2592_v21 = vunpack.c.l.bf16 %v2638_v10  ;;  %v2593_v25 = vunpack.c.h.bf16 %v2638_v10 }
  0x16   : > { %216 = vst.msk [vmem:[#allocation2 + $0x78] sm:$0xff] %vm199_vm0, %v3389_v0  ;;  %217 = vst.msk [vmem:[#allocation2 + $0x80] sm:$0xff] %vm199_vm0, %v3389_v0  ;;  %v385_v12 = vld [vmem:[#allocation2 + $0x9] sm:$0xff]  ;;  %v2640_v22 = vld [vmem:[%s3503_s21 + $0x38] sm:$0xff]   ;;  %v2596_v26 = vunpack.c.l.bf16 %v2639_v17  ;;  %v2597_v27 = vunpack.c.h.bf16 %v2639_v17  ;;  %vm1964_vm10 = vcmask 293888   ;;  %vm2384_vm11 = vcmask 60416  }
  0x17   : > { %219 = vst.msk [vmem:[#allocation2 + $0x90] sm:$0xff] %vm199_vm0, %v3389_v0  ;;  %220 = vst.msk [vmem:[#allocation2 + $0x98] sm:$0xff] %vm199_vm0, %v3389_v0  ;;  %v2731_v18 = vpack.i.bf16 %v385_v12, %v384_v11  ;;  %v2641_v23 = vld [vmem:[%s3503_s21 + $0x40] sm:$0xff]   ;;  %v2642_v24 = vld [vmem:[%s3503_s21 + $0x48] sm:$0xff]   ;;  %v2600_v28 = vunpack.c.l.bf16 %v2640_v22  ;;  %v2601_v32 = vunpack.c.h.bf16 %v2640_v22 }
  0x18   : > { %221 = vst.msk [vmem:[#allocation2 + $0xa0] sm:$0x3] %vm202_vm1, %v3389_v0  ;;  %224 = vst.msk [vmem:[#allocation2 + $0xb8] sm:$0x3] %vm202_vm1, %v3389_v0  ;;  %v2643_v29 = vld [vmem:[%s3503_s21 + $0x50] sm:$0xff]   ;;  %v2644_v30 = vld [vmem:[%s3503_s21 + $0x58] sm:$0xff]   ;;  %v2604_v33 = vunpack.c.l.bf16 %v2641_v23  ;;  %v2605_v34 = vunpack.c.h.bf16 %v2641_v23  ;;  %v2608_v35 = vunpack.c.l.bf16 %v2642_v24  ;;  %v2609_v38 = vunpack.c.h.bf16 %v2642_v24 }
  0x19   : > { %222 = vst.msk [vmem:[#allocation2 + $0xa8] sm:$0xff] %vm199_vm0, %v3389_v0  ;;  %223 = vst.msk [vmem:[#allocation2 + $0xb0] sm:$0xff] %vm199_vm0, %v3389_v0  ;;  %v2645_v31 = vld [vmem:[%s3503_s21 + $0x60] sm:$0xff]   ;;  %2732 = vrot.lane.b32.xlu0 %v2731_v18, %s3390_s22  ;;  %v2646_v36 = vld [vmem:[%s3503_s21 + $0x68] sm:$0xff]   ;;  %v2612_v39 = vunpack.c.l.bf16 %v2643_v29  ;;  %v2613_v40 = vunpack.c.h.bf16 %v2643_v29  ;;  %v2616_v41 = vunpack.c.l.bf16 %v2644_v30  ;;  %v2617_v43 = vunpack.c.h.bf16 %v2644_v30 }
  0x1a   : > { %225 = vst.msk [vmem:[#allocation2 + $0xc0] sm:$0xff] %vm199_vm0, %v3389_v0  ;;  %226 = vst.msk [vmem:[#allocation2 + $0xc8] sm:$0xff] %vm199_vm0, %v3389_v0  ;;  %v2647_v37 = vld [vmem:[%s3503_s21 + $0x70] sm:$0xff]   ;;  %v2648_v42 = vld [vmem:[%s3503_s21 + $0x78] sm:$0xff]   ;;  %v2620_v44 = vunpack.c.l.bf16 %v2645_v31  ;;  %v2621_v45 = vunpack.c.h.bf16 %v2645_v31  ;;  %v2624_v46 = vunpack.c.l.bf16 %v2646_v36  ;;  %v2625_v47 = vunpack.c.h.bf16 %v2646_v36 }
  0x1b   : > { %227 = vst.msk [vmem:[#allocation2 + $0xd0] sm:$0x3] %vm202_vm1, %v3389_v0  ;;  %230 = vst.msk [vmem:[#allocation2 + $0xe8] sm:$0x3] %vm202_vm1, %v3389_v0  ;;  %v2628_v48 = vunpack.c.l.bf16 %v2647_v37  ;;  %v2629_v49 = vunpack.c.h.bf16 %v2647_v37  ;;  %v2632_v50 = vunpack.c.l.bf16 %v2648_v42  ;;  %v2633_v51 = vunpack.c.h.bf16 %v2648_v42  ;;  %v417_v36 = vld [vmem:[#allocation2 + $0xa] sm:$0xff] }
  0x1c   : > { %228 = vst.msk [vmem:[#allocation2 + $0xd8] sm:$0xff] %vm199_vm0, %v3389_v0  ;;  %229 = vst.msk [vmem:[#allocation2 + $0xe0] sm:$0xff] %vm199_vm0, %v3389_v0 }
  0x1d   : > { %231 = vst.msk [vmem:[#allocation2 + $0xf0] sm:$0xff] %vm199_vm0, %v3389_v0  ;;  %232 = vst.msk [vmem:[#allocation2 + $0xf8] sm:$0xff] %vm199_vm0, %v3389_v0 }
  0x1e   : > { %233 = vst.msk [vmem:[#allocation2 + $0x100] sm:$0x3] %vm202_vm1, %v3389_v0  ;;  %236 = vst.msk [vmem:[#allocation2 + $0x118] sm:$0x3] %vm202_vm1, %v3389_v0 }
  0x1f   : > { %234 = vst.msk [vmem:[#allocation2 + $0x108] sm:$0xff] %vm199_vm0, %v3389_v0  ;;  %235 = vst.msk [vmem:[#allocation2 + $0x110] sm:$0xff] %vm199_vm0, %v3389_v0 }
  0x20   : > { %237 = vst.msk [vmem:[#allocation2 + $0x120] sm:$0xff] %vm199_vm0, %v3389_v0  ;;  %238 = vst.msk [vmem:[#allocation2 + $0x128] sm:$0xff] %vm199_vm0, %v3389_v0 }
  0x21   : > { %239 = vst.msk [vmem:[#allocation2 + $0x130] sm:$0x3] %vm202_vm1, %v3389_v0  ;;  %242 = vst.msk [vmem:[#allocation2 + $0x148] sm:$0x3] %vm202_vm1, %v3389_v0 }
  0x22   : > { %240 = vst.msk [vmem:[#allocation2 + $0x138] sm:$0xff] %vm199_vm0, %v3389_v0  ;;  %241 = vst.msk [vmem:[#allocation2 + $0x140] sm:$0xff] %vm199_vm0, %v3389_v0 }
  0x23   : > { %243 = vst.msk [vmem:[#allocation2 + $0x150] sm:$0xff] %vm199_vm0, %v3389_v0  ;;  %244 = vst.msk [vmem:[#allocation2 + $0x158] sm:$0xff] %vm199_vm0, %v3389_v0 }
  0x24   : > { %245 = vst.msk [vmem:[#allocation2 + $0x160] sm:$0x3] %vm202_vm1, %v3389_v0  ;;  %248 = vst.msk [vmem:[#allocation2 + $0x178] sm:$0x3] %vm202_vm1, %v3389_v0 }
  0x25   : > { %246 = vst.msk [vmem:[#allocation2 + $0x168] sm:$0xff] %vm199_vm0, %v3389_v0  ;;  %247 = vst.msk [vmem:[#allocation2 + $0x170] sm:$0xff] %vm199_vm0, %v3389_v0 }
  0x26   : > { %249 = vst.msk [vmem:[#allocation2 + $0x180] sm:$0xff] %vm199_vm0, %v3389_v0  ;;  %250 = vst.msk [vmem:[#allocation2 + $0x188] sm:$0xff] %vm199_vm0, %v3389_v0 }
  0x27   : > { %251 = vst.msk [vmem:[#allocation2 + $0x190] sm:$0x3] %vm202_vm1, %v3389_v0  ;;  %254 = vst.msk [vmem:[#allocation2 + $0x1a8] sm:$0x3] %vm202_vm1, %v3389_v0 }
  0x28   : > { %252 = vst.msk [vmem:[#allocation2 + $0x198] sm:$0xff] %vm199_vm0, %v3389_v0  ;;  %253 = vst.msk [vmem:[#allocation2 + $0x1a0] sm:$0xff] %vm199_vm0, %v3389_v0 }
  0x29   : > { %322 = vst.msk [vmem:[#allocation2 + $0x31] sm:$0xff] %vm199_vm0, %v2576_v4  ;;  %323 = vst.msk [vmem:[#allocation2 + $0x39] sm:$0xff] %vm199_vm0, %v2577_v5 }
  0x2a   : > { %320 = vst.msk [vmem:[#allocation2 + $0x19] sm:$0xff] %vm199_vm0, %v2572_v6  ;;  %321 = vst.msk [vmem:[#allocation2 + $0x21] sm:$0xff] %vm199_vm0, %v2573_v7 }
  0x2b   : > { %324 = vst.msk [vmem:[#allocation2 + $0x49] sm:$0xff] %vm199_vm0, %v2580_v13  ;;  %325 = vst.msk [vmem:[#allocation2 + $0x51] sm:$0xff] %vm199_vm0, %v2581_v14 }
  0x2c   : > { %326 = vst.msk [vmem:[#allocation2 + $0x61] sm:$0xff] %vm199_vm0, %v2584_v15  ;;  %327 = vst.msk [vmem:[#allocation2 + $0x69] sm:$0xff] %vm199_vm0, %v2585_v16 }
  0x2d   : > { %328 = vst.msk [vmem:[#allocation2 + $0x79] sm:$0xff] %vm199_vm0, %v2588_v19  ;;  %329 = vst.msk [vmem:[#allocation2 + $0x81] sm:$0xff] %vm199_vm0, %v2589_v20 }
  0x2e   : > { %330 = vst.msk [vmem:[#allocation2 + $0x91] sm:$0xff] %vm199_vm0, %v2592_v21  ;;  %331 = vst.msk [vmem:[#allocation2 + $0x99] sm:$0xff] %vm199_vm0, %v2593_v25 }
  0x2f   : > { %332 = vst.msk [vmem:[#allocation2 + $0xa9] sm:$0xff] %vm199_vm0, %v2596_v26  ;;  %333 = vst.msk [vmem:[#allocation2 + $0xb1] sm:$0xff] %vm199_vm0, %v2597_v27 }
  0x30   : > { %334 = vst.msk [vmem:[#allocation2 + $0xc1] sm:$0xff] %vm199_vm0, %v2600_v28  ;;  %335 = vst.msk [vmem:[#allocation2 + $0xc9] sm:$0xff] %vm199_vm0, %v2601_v32  ;;  %v388_v52 = vld [vmem:[#allocation2 + $0x31] sm:$0xff]  ;;  %v389_v53 = vld [vmem:[#allocation2 + $0x39] sm:$0xff] }
  0x31   : > { %336 = vst.msk [vmem:[#allocation2 + $0xd9] sm:$0xff] %vm199_vm0, %v2604_v33  ;;  %337 = vst.msk [vmem:[#allocation2 + $0xe1] sm:$0xff] %vm199_vm0, %v2605_v34  ;;  %v386_v54 = vld [vmem:[#allocation2 + $0x19] sm:$0xff]  ;;  %v3552_v55 = vpack.i.bf16 %v389_v53, %v388_v52  ;;  %v387_v56 = vld [vmem:[#allocation2 + $0x21] sm:$0xff] }
  0x32   : > { %338 = vst.msk [vmem:[#allocation2 + $0xf1] sm:$0xff] %vm199_vm0, %v2608_v35  ;;  %339 = vst.msk [vmem:[#allocation2 + $0xf9] sm:$0xff] %vm199_vm0, %v2609_v38  ;;  %v3554_v57 = vld [vmem:[#allocation2 + $0x49] sm:$0xff]  ;;  %v3556_v58 = vld [vmem:[#allocation2 + $0x51] sm:$0xff]  ;;  %v3560_v59 = vpack.i.bf16 %v387_v56, %v386_v54 }
  0x33   : > { %340 = vst.msk [vmem:[#allocation2 + $0x109] sm:$0xff] %vm199_vm0, %v2612_v39  ;;  %341 = vst.msk [vmem:[#allocation2 + $0x111] sm:$0xff] %vm199_vm0, %v2613_v40  ;;  %v392_v60 = vld [vmem:[#allocation2 + $0x61] sm:$0xff]  ;;  %v393_v61 = vld [vmem:[#allocation2 + $0x69] sm:$0xff]  ;;  %2742 = vrot.lane.b32.xlu1 %v3552_v55, %s3390_s22  ;;  %v3566_v62 = vpack.i.bf16 %v3556_v58, %v3554_v57 }
  0x34   : > { %342 = vst.msk [vmem:[#allocation2 + $0x121] sm:$0xff] %vm199_vm0, %v2616_v41  ;;  %343 = vst.msk [vmem:[#allocation2 + $0x129] sm:$0xff] %vm199_vm0, %v2617_v43  ;;  %2737 = vrot.lane.b32.xlu0 %v3560_v59, %s3390_s22  ;;  %v3570_v63 = vpack.i.bf16 %v393_v61, %v392_v60  ;;  %v394_v0 = vld [vmem:[#allocation2 + $0x79] sm:$0xff]  ;;  %v395_v1 = vld [vmem:[#allocation2 + $0x81] sm:$0xff] }
  0x35   : > { %344 = vst.msk [vmem:[#allocation2 + $0x139] sm:$0xff] %vm199_vm0, %v2620_v44  ;;  %345 = vst.msk [vmem:[#allocation2 + $0x141] sm:$0xff] %vm199_vm0, %v2621_v45  ;;  %v396_v2 = vld [vmem:[#allocation2 + $0x91] sm:$0xff]  ;;  %v397_v3 = vld [vmem:[#allocation2 + $0x99] sm:$0xff]  ;;  %v2756_v9 = vpack.i.bf16 %v395_v1, %v394_v0 }
  0x36   : > { %346 = vst.msk [vmem:[#allocation2 + $0x151] sm:$0xff] %vm199_vm0, %v2624_v46  ;;  %347 = vst.msk [vmem:[#allocation2 + $0x159] sm:$0xff] %vm199_vm0, %v2625_v47  ;;  %v2761_v12 = vpack.i.bf16 %v397_v3, %v396_v2  ;;  %v398_v13 = vld [vmem:[#allocation2 + $0xa9] sm:$0xff]  ;;  %v399_v14 = vld [vmem:[#allocation2 + $0xb1] sm:$0xff] }
  0x37   : > { %348 = vst.msk [vmem:[#allocation2 + $0x169] sm:$0xff] %vm199_vm0, %v2628_v48  ;;  %349 = vst.msk [vmem:[#allocation2 + $0x171] sm:$0xff] %vm199_vm0, %v2629_v49  ;;  %2747 = vrot.lane.b32.xlu1 %v3566_v62, %s3390_s22  ;;  %v400_v15 = vld [vmem:[#allocation2 + $0xc1] sm:$0xff]  ;;  %v401_v16 = vld [vmem:[#allocation2 + $0xc9] sm:$0xff]  ;;  %v2766_v17 = vpack.i.bf16 %v399_v14, %v398_v13 }
  0x38   : > { %350 = vst.msk [vmem:[#allocation2 + $0x181] sm:$0xff] %vm199_vm0, %v2632_v50  ;;  %351 = vst.msk [vmem:[#allocation2 + $0x189] sm:$0xff] %vm199_vm0, %v2633_v51  ;;  %v3572_v4 = vld [vmem:[#allocation2 + $0xd9] sm:$0xff]  ;;  %v3574_v5 = vld [vmem:[#allocation2 + $0xe1] sm:$0xff]  ;;  %2752 = vrot.lane.b32.xlu0 %v3570_v63, %s3390_s22  ;;  %v2771_v18 = vpack.i.bf16 %v401_v16, %v400_v15 }
  0x39   : > { %v3576_v6 = vld [vmem:[#allocation2 + $0xf1] sm:$0xff]  ;;  %v3578_v7 = vld [vmem:[#allocation2 + $0xf9] sm:$0xff]  ;;  %v2981_v8 = vpack.i.bf16 %v3572_v4, %v3554_v57  ;;  %v2776_v19 = vpack.i.bf16 %v3574_v5, %v3572_v4  ;;  %v416_v35 = vld [vmem:[#allocation2 + $0x2] sm:$0xff] }
  0x3a   : > { %v3598_v20 = vpack.i.bf16 %v3578_v7, %v3576_v6  ;;  %v406_v21 = vld [vmem:[#allocation2 + $0x109] sm:$0xff]  ;;  %v407_v22 = vld [vmem:[#allocation2 + $0x111] sm:$0xff]  ;;  %v2811_v38 = vpack.i.bf16 %v417_v36, %v416_v35  ;;  %v418_v39 = vld [vmem:[#allocation2 + $0x1a] sm:$0xff] }
  0x3b   : > { %2757 = vrot.lane.b32.xlu1 %v2756_v9, %s3390_s22  ;;  %v408_v23 = vld [vmem:[#allocation2 + $0x121] sm:$0xff]  ;;  %v409_v24 = vld [vmem:[#allocation2 + $0x129] sm:$0xff]  ;;  %v3601_v25 = vpack.i.bf16 %v407_v22, %v406_v21  ;;  %v420_v41 = vld [vmem:[#allocation2 + $0x32] sm:$0xff] }
  0x3c   : > { %2762 = vrot.lane.b32.xlu0 %v2761_v12, %s3390_s22  ;;  %v3605_v26 = vpack.i.bf16 %v409_v24, %v408_v23  ;;  %v410_v27 = vld [vmem:[#allocation2 + $0x139] sm:$0xff]  ;;  %v411_v28 = vld [vmem:[#allocation2 + $0x141] sm:$0xff]  ;;  %v422_v45 = vld [vmem:[#allocation2 + $0x4a] sm:$0xff] }
  0x3d   : > { %v412_v29 = vld [vmem:[#allocation2 + $0x151] sm:$0xff]  ;;  %v413_v30 = vld [vmem:[#allocation2 + $0x159] sm:$0xff]  ;;  %v3609_v31 = vpack.i.bf16 %v411_v28, %v410_v27  ;;  %v419_v40 = vld [vmem:[#allocation2 + $0x22] sm:$0xff] }
  0x3e   : > { %v2801_v32 = vpack.i.bf16 %v413_v30, %v412_v29  ;;  %v414_v33 = vld [vmem:[#allocation2 + $0x169] sm:$0xff]  ;;  %v415_v34 = vld [vmem:[#allocation2 + $0x171] sm:$0xff]  ;;  %v421_v42 = vld [vmem:[#allocation2 + $0x3a] sm:$0xff]  ;;  %v3617_v43 = vpack.i.bf16 %v419_v40, %v418_v39 }
  0x3f   : > { %2767 = vrot.lane.b32.xlu1 %v2766_v17, %s3390_s22  ;;  %v2806_v37 = vpack.i.bf16 %v415_v34, %v414_v33  ;;  %v3620_v44 = vpack.i.bf16 %v421_v42, %v420_v41  ;;  %v423_v46 = vld [vmem:[#allocation2 + $0x52] sm:$0xff]  ;;  %v424_v47 = vld [vmem:[#allocation2 + $0x62] sm:$0xff]  ;;  %v425_v48 = vld [vmem:[#allocation2 + $0x6a] sm:$0xff] }
  0x40   : > { %2772 = vrot.lane.b32.xlu0 %v2771_v18, %s3390_s22  ;;  %v3624_v49 = vpack.i.bf16 %v423_v46, %v422_v45  ;;  %v3628_v50 = vpack.i.bf16 %v425_v48, %v424_v47  ;;  %v426_v51 = vld [vmem:[#allocation2 + $0x7a] sm:$0xff]  ;;  %v427_v52 = vld [vmem:[#allocation2 + $0x82] sm:$0xff]  ;;  %v428_v53 = vld [vmem:[#allocation2 + $0x92] sm:$0xff] }
  0x41   : > { %v429_v54 = vld [vmem:[#allocation2 + $0x9a] sm:$0xff]  ;;  %v3632_v56 = vpack.i.bf16 %v427_v52, %v426_v51  ;;  %v430_v61 = vld [vmem:[#allocation2 + $0xaa] sm:$0xff]  ;;  %v431_v0 = vld [vmem:[#allocation2 + $0xb2] sm:$0xff] }
  0x42   : > { %v2841_v60 = vpack.i.bf16 %v429_v54, %v428_v53  ;;  %v432_v1 = vld [vmem:[#allocation2 + $0xc2] sm:$0xff]  ;;  %v433_v2 = vld [vmem:[#allocation2 + $0xca] sm:$0xff]  ;;  %v2846_v3 = vpack.i.bf16 %v431_v0, %v430_v61  ;;  %v434_v12 = vld [vmem:[#allocation2 + $0xda] sm:$0xff] }
  0x43   : > { %2777 = vrot.lane.b32.xlu1 %v2776_v19, %s3390_s22  ;;  %v2851_v9 = vpack.i.bf16 %v433_v2, %v432_v1  ;;  %v435_v13 = vld [vmem:[#allocation2 + $0xe2] sm:$0xff]  ;;  %v436_v14 = vld [vmem:[#allocation2 + $0xf2] sm:$0xff]  ;;  %v437_v15 = vld [vmem:[#allocation2 + $0xfa] sm:$0xff] }
  0x44   : > { %2782 = vrot.lane.b32.xlu0 %v3598_v20, %s3390_s22  ;;  %v3640_v16 = vpack.i.bf16 %v435_v13, %v434_v12  ;;  %v3643_v17 = vpack.i.bf16 %v437_v15, %v436_v14  ;;  %v438_v18 = vld [vmem:[#allocation2 + $0x10a] sm:$0xff]  ;;  %v439_v19 = vld [vmem:[#allocation2 + $0x112] sm:$0xff]  ;;  %v440_v21 = vld [vmem:[#allocation2 + $0x122] sm:$0xff] }
  0x45   : > { %v441_v22 = vld [vmem:[#allocation2 + $0x12a] sm:$0xff]  ;;  %v3647_v23 = vpack.i.bf16 %v439_v19, %v438_v18  ;;  %v442_v27 = vld [vmem:[#allocation2 + $0x13a] sm:$0xff]  ;;  %v443_v28 = vld [vmem:[#allocation2 + $0x142] sm:$0xff] }
  0x46   : > { %v3651_v24 = vpack.i.bf16 %v441_v22, %v440_v21  ;;  %v444_v29 = vld [vmem:[#allocation2 + $0x152] sm:$0xff]  ;;  %v445_v30 = vld [vmem:[#allocation2 + $0x15a] sm:$0xff]  ;;  %v446_v34 = vld [vmem:[#allocation2 + $0x16a] sm:$0xff] }
  0x47   : > { %2787 = vrot.lane.b32.xlu1 %v3601_v25, %s3390_s22  ;;  %v3659_v33 = vpack.i.bf16 %v445_v30, %v444_v29  ;;  %v447_v35 = vld [vmem:[#allocation2 + $0x172] sm:$0xff]  ;;  %v452_v42 = vld [vmem:[#allocation2 + $0x48] sm:$0xff]  ;;  %v3680_v48 = vld [vmem:[#allocation2 + $0x60] sm:$0xff] }
  0x48   : > { %2792 = vrot.lane.b32.xlu0 %v3605_v26, %s3390_s22  ;;  %v3661_v36 = vld [vmem:[#allocation2 + $0x18] sm:$0xff]  ;;  %v3671_v40 = vld [vmem:[#allocation2 + $0x30] sm:$0xff]  ;;  %v3682_v51 = vld [vmem:[#allocation2 + $0x68] sm:$0xff] }
  0x49   : > { %v451_v41 = vld [vmem:[#allocation2 + $0x38] sm:$0xff]  ;;  %v453_v45 = vld [vmem:[#allocation2 + $0x50] sm:$0xff]  ;;  %v3686_v53 = vld [vmem:[#allocation2 + $0x80] sm:$0xff]  ;;  %v3692_v54 = vpack.i.bf16 %v3682_v51, %v3680_v48 }
  0x4a   : > { %v3675_v46 = vpack.i.bf16 %v451_v41, %v3671_v40  ;;  %v3678_v47 = vpack.i.bf16 %v453_v45, %v452_v42  ;;  %v3684_v52 = vld [vmem:[#allocation2 + $0x78] sm:$0xff]  ;;  %v3700_v61 = vld [vmem:[#allocation2 + $0x90] sm:$0xff]  ;;  %v3704_v1 = vld [vmem:[#allocation2 + $0xa8] sm:$0xff] }
  0x4b   : > { %2797 = vrot.lane.b32.xlu1 %v3609_v31, %s3390_s22  ;;  %v3702_v0 = vld [vmem:[#allocation2 + $0x98] sm:$0xff]  ;;  %v3706_v2 = vld [vmem:[#allocation2 + $0xb0] sm:$0xff]  ;;  %v3720_v12 = vld [vmem:[#allocation2 + $0xc0] sm:$0xff] }
  0x4c   : > { %2802 = vrot.lane.b32.xlu0 %v2801_v32, %s3390_s22  ;;  %v3655_v32 = vpack.i.bf16 %v443_v28, %v442_v27  ;;  %4805 = vst [vmem:[#allocation3_spill] sm:$0xff] %v3720_v12  ;;  %v3722_v13 = vld [vmem:[#allocation2 + $0xc8] sm:$0xff]  ;;  %v3724_v14 = vld [vmem:[#allocation2 + $0xd8] sm:$0xff]  ;;  %v3726_v15 = vld [vmem:[#allocation2 + $0xe0] sm:$0xff] }
  0x4d   : > { %4806 = vst [vmem:[#allocation4_spill] sm:$0xff] %v3722_v13  ;;  %4807 = vst [vmem:[#allocation5_spill] sm:$0xff] %v3724_v14  ;;  %v2926_v18 = vpack.i.bf16 %v3722_v13, %v3720_v12  ;;  %v2931_v19 = vpack.i.bf16 %v3726_v15, %v3724_v14  ;;  %v466_v21 = vld [vmem:[#allocation2 + $0xf0] sm:$0xff]  ;;  %v467_v22 = vld [vmem:[#allocation2 + $0xf8] sm:$0xff] }
  0x4e   : > { %4808 = vst [vmem:[#allocation6_spill] sm:$0xff] %v3726_v15  ;;  %v468_v27 = vld [vmem:[#allocation2 + $0x108] sm:$0xff]  ;;  %v469_v28 = vld [vmem:[#allocation2 + $0x110] sm:$0xff]  ;;  %v2936_v29 = vpack.i.bf16 %v467_v22, %v466_v21 }
  0x4f   : > { %2807 = vrot.lane.b32.xlu1 %v2806_v37, %s3390_s22  ;;  %v3663_v37 = vld [vmem:[#allocation2 + $0x20] sm:$0xff]  ;;  %v2941_v30 = vpack.i.bf16 %v469_v28, %v468_v27  ;;  %v3756_v45 = vld [vmem:[#allocation2 + $0x150] sm:$0xff]  ;;  %v479_v11 = vld [vmem:[#allocation2 + $0x188] sm:$0xff] }
  0x50   : > { %2812 = vrot.lane.b32.xlu0 %v2811_v38, %s3391_s23  ;;  %v2886_v38 = vpack.i.bf16 %v447_v35, %v446_v34  ;;  %v2891_v39 = vpack.i.bf16 %v3663_v37, %v3661_v36  ;;  %v3738_v34 = vld [vmem:[#allocation2 + $0x120] sm:$0xff]  ;;  %v3740_v35 = vld [vmem:[#allocation2 + $0x128] sm:$0xff]  ;;  %v3762_v21 = vld [vmem:[#allocation2 + $0x170] sm:$0xff] }
  0x51   : > { %v3749_v41 = vpack.i.bf16 %v3740_v35, %v3738_v34  ;;  %v478_v28 = vld [vmem:[#allocation2 + $0x180] sm:$0xff] }
  0x52   : > { %v2966_v10 = vpack.i.bf16 %v479_v11, %v478_v28  ;;  %v4809_v11 = vpack.i.bf16 %v3576_v6, %v3574_v5  ;;  %v3372_v5 = vld [vmem:[%s4782_s1 + $0x8] sm:$0xff]  }
  0x53   : > { %2817 = vrot.lane.b32.xlu1 %v3617_v43, %s3391_s23 }
  0x54   : > { %2822 = vrot.lane.b32.xlu0 %v3620_v44, %s3391_s23 }
  0x57   : > { %2827 = vrot.lane.b32.xlu1 %v3624_v49, %s3391_s23 }
  0x58   : > { %2832 = vrot.lane.b32.xlu0 %v3628_v50, %s3391_s23 }
  0x5b   : > { %2837 = vrot.lane.b32.xlu1 %v3632_v56, %s3391_s23 }
  0x5c   : > { %2842 = vrot.lane.b32.xlu0 %v2841_v60, %s3391_s23  ;;  %v3698_v60 = vpack.i.bf16 %v3686_v53, %v3684_v52 }
  0x5f   : > { %2847 = vrot.lane.b32.xlu1 %v2846_v3, %s3391_s23  ;;  %v3712_v3 = vpack.i.bf16 %v3702_v0, %v3700_v61 }
  0x60   : > { %2852 = vrot.lane.b32.xlu0 %v2851_v9, %s3391_s23  ;;  %v3718_v9 = vpack.i.bf16 %v3706_v2, %v3704_v1 }
  0x63   : > { %2857 = vrot.lane.b32.xlu1 %v3640_v16, %s3391_s23 }
  0x64   : > { %2862 = vrot.lane.b32.xlu0 %v3643_v17, %s3391_s23 }
  0x67   : > { %2867 = vrot.lane.b32.xlu1 %v3647_v23, %s3391_s23 }
  0x68   : > { %2872 = vrot.lane.b32.xlu0 %v3651_v24, %s3391_s23 }
  0x6b   : > { %2877 = vrot.lane.b32.xlu1 %v3655_v32, %s3391_s23 }
  0x6c   : > { %2882 = vrot.lane.b32.xlu0 %v3659_v33, %s3391_s23 }
  0x6f   : > { %2887 = vrot.lane.b32.xlu1 %v2886_v38, %s3391_s23  ;;  %v3742_v38 = vld [vmem:[#allocation2 + $0x138] sm:$0xff] }
  0x70   : > { %2892 = vrot.lane.b32.xlu0 %v2891_v39, %s3392_s24  ;;  %v3744_v39 = vld [vmem:[#allocation2 + $0x140] sm:$0xff] }
  0x71   : > { %v3754_v42 = vpack.i.bf16 %v3744_v39, %v3742_v38 }
  0x73   : > { %2897 = vrot.lane.b32.xlu1 %v3675_v46, %s3392_s24 }
  0x74   : > { %2902 = vrot.lane.b32.xlu0 %v3678_v47, %s3392_s24 }
  0x77   : > { %2907 = vrot.lane.b32.xlu1 %v3692_v54, %s3392_s24 }
  0x78   : > { %2912 = vrot.lane.b32.xlu0 %v3698_v60, %s3392_s24 }
  0x7b   : > { %2917 = vrot.lane.b32.xlu1 %v3712_v3, %s3392_s24 }
  0x7c   : > { %2922 = vrot.lane.b32.xlu0 %v3718_v9, %s3392_s24 }
  0x7f   : > { %2927 = vrot.lane.b32.xlu1 %v2926_v18, %s3392_s24  ;;  %v3758_v18 = vld [vmem:[#allocation2 + $0x158] sm:$0xff] }
  0x80   : > { %2932 = vrot.lane.b32.xlu0 %v2931_v19, %s3392_s24  ;;  %v3760_v19 = vld [vmem:[#allocation2 + $0x168] sm:$0xff]  ;;  %v3768_v22 = vpack.i.bf16 %v3758_v18, %v3756_v45 }
  0x81   : > { %v3774_v27 = vpack.i.bf16 %v3762_v21, %v3760_v19 }
  0x83   : > { %2937 = vrot.lane.b32.xlu1 %v2936_v29, %s3392_s24 }
  0x84   : > { %2942 = vrot.lane.b32.xlu0 %v2941_v30, %s3392_s24 }
  0x87   : > { %2947 = vrot.lane.b32.xlu1 %v3749_v41, %s3392_s24 }
  0x88   : > { %2952 = vrot.lane.b32.xlu0 %v3754_v42, %s3392_s24 }
  0x8b   : > { %2957 = vrot.lane.b32.xlu1 %v3768_v22, %s3392_s24  ;;  %v3805_v57 = vpop.permute.xlu0 %2732 }
  0x8c   : > { %2962 = vrot.lane.b32.xlu0 %v3774_v27, %s3392_s24 }
  0x8f   : > { %2967 = vrot.lane.b32.xlu1 %v2966_v10, %s3392_s24  ;;  %v4810_v10 = vpack.i.bf16 %v3556_v58, %v3578_v7  ;;  %v3371_v58 = vld [vmem:[%s4782_s1] sm:$0xff]  }
  0x90   : > { %2972 = vrot.lane.b32.xlu0 %v3560_v59, %s3393_s25  ;;  %2668 = vmatprep.subr.bf16.mxu0 %v3371_v58 }
  0x91   : > { %2706 = vmatprep.subr.bf16.mxu1 %v3371_v58  ;;  %2669 = vmatpush3.bf16.msra.mxu0 %v3371_v58 }
  0x92   : > { %2709 = vmatpush3.bf16.msra.mxu1 %v3371_v58  ;;  %2670 = vmatprep.subr.bf16.mxu0 %v3372_v5  ;;  %v582_v58 = vld [vmem:[#allocation2 + $0x69] sm:$0xff] }
  0x93   : > { %2977 = vrot.lane.b32.xlu1 %v3552_v55, %s3393_s25  ;;  %2707 = vmatprep.subr.bf16.mxu1 %v3372_v5 }
  0x94   : > { %2982 = vrot.lane.b32.xlu0 %v2981_v8, %s3393_s25  ;;  %v3373_v8 = vld [vmem:[%s4782_s1 + $0x10] ss:$0 sps:$4 sm:$0x33]  }
  0x95   : > { %2671 = vmatpush3.bf16.msra.mxu0 %v3372_v5 }
  0x96   : > { %2710 = vmatpush3.bf16.msra.mxu1 %v3372_v5  ;;  %2712 = vmatprep.subr.msk.bf16.mxu0 %vm2013_vm2, %v3373_v8 }
  0x97   : > { %2987 = vrot.lane.b32.xlu1 %v4809_v11, %s3393_s25  ;;  %2713 = vmatprep.subr.msk.bf16.mxu1 %vm2013_vm2, %v3373_v8 }
  0x98   : > { %2992 = vrot.lane.b32.xlu0 %v4810_v10, %s3393_s25  ;;  %v581_v10 = vld [vmem:[#allocation2 + $0x61] sm:$0xff] }
  0x9b   : > { %2997 = vrot.lane.b32.xlu1 %v3617_v43, %s3394_s26  ;;  %v2015_v43 = vsel %vm2013_vm2, %v3373_v8, 0 }
  0x9c   : > { %3002 = vrot.lane.b32.xlu0 %v3640_v16, %s3394_s26  ;;  %2673 = vmatpush3.bf16.msra.mxu0 %v2015_v43 }
  0x9d   : > { %2711 = vmatpush3.bf16.msra.mxu1 %v2015_v43  ;;  %v583_v43 = vld [vmem:[#allocation2 + $0x79] sm:$0xff] }
  0x9f   : > { %3007 = vrot.lane.b32.xlu1 %v3620_v44, %s3394_s26 }
  0xa0   : > { %3012 = vrot.lane.b32.xlu0 %v3643_v17, %s3394_s26 }
  0xa3   : > { %3017 = vrot.lane.b32.xlu1 %v3675_v46, %s3395_s29 }
  0xa4   : > { %3022 = vrot.lane.b32.xlu0 %v2936_v29, %s3395_s29 }
  0xa5   : > { %v3813_v59 = vpop.permute.xlu1 %2742 }
  0xa6   : > { %v3815_v4 = vpop.permute.xlu0 %2737 }
  0xa7   : > { %3027 = vrot.lane.b32.xlu1 %v3678_v47, %s3395_s29 }
  0xa8   : > { %3032 = vrot.lane.b32.xlu0 %v2941_v30, %s3395_s29 }
  0xa9   : > { %v3823_v6 = vpop.permute.xlu1 %2747 }
  0xaa   : > { %4811 = vst [vmem:[#allocation7_spill] sm:$0xff] %v3823_v6  ;;  %v3825_v7 = vpop.permute.xlu0 %2752 }
  0xab   : > { %3037 = vrot.lane.b32.xlu1 %v3552_v55, %s3396_s8 }
  0xac   : > { %3042 = vrot.lane.b32.xlu0 %v3598_v20, %s3396_s8 }
  0xad   : > { %v3834_v16 = vpop.permute.xlu1 %2757 }
  0xae   : > { %v3836_v46 = vpop.permute.xlu0 %2762 }
  0xaf   : > { %3047 = vrot.lane.b32.xlu1 %v3566_v62, %s3396_s8 }
  0xb0   : > { %3052 = vrot.lane.b32.xlu0 %v3601_v25, %s3396_s8 }
  0xb1   : > { %v3842_v55 = vpop.permute.xlu1 %2767 }
  0xb2   : > { %v3844_v47 = vpop.permute.xlu0 %2772 }
  0xb3   : > { %3057 = vrot.lane.b32.xlu1 %v3620_v44, %s3397_s9 }
  0xb4   : > { %3062 = vrot.lane.b32.xlu0 %v3643_v17, %s3397_s9 }
  0xb5   : > { %v3850_v20 = vpop.permute.xlu1 %2777 }
  0xb6   : > { %v3852_v29 = vpop.permute.xlu0 %2782 }
  0xb7   : > { %4812 = vst [vmem:[#allocation8_spill] sm:$0xff] %v3852_v29  ;;  %3067 = vrot.lane.b32.xlu1 %v3624_v49, %s3397_s9 }
  0xb8   : > { %3072 = vrot.lane.b32.xlu0 %v3647_v23, %s3397_s9 }
  0xb9   : > { %v3858_v62 = vpop.permute.xlu1 %2787 }
  0xba   : > { %4813 = vst [vmem:[#allocation9_spill] sm:$0xff] %v3858_v62  ;;  %v3860_v30 = vpop.permute.xlu0 %2792  ;;  %v584_v62 = vld [vmem:[#allocation2 + $0x81] sm:$0xff] }
  0xbb   : > { %3077 = vrot.lane.b32.xlu1 %v3601_v25, %s3393_s25 }
  0xbc   : > { %3082 = vrot.lane.b32.xlu0 %v3570_v63, %s3393_s25 }
  0xbd   : > { %v3866_v44 = vpop.permute.xlu1 %2797 }
  0xbe   : > { %v2803_v17 = vpop.permute.xlu0 %2802 }
  0xbf   : > { %3087 = vrot.lane.b32.xlu1 %v3605_v26, %s3393_s25 }
  0xc0   : > { %3092 = vrot.lane.b32.xlu0 %v3624_v49, %s3394_s26 }
  0xc1   : > { %v3872_v28 = vpop.permute.xlu1 %2807 }
  0xc2   : > { %v3874_v11 = vpop.permute.xlu0 %2812  ;;  %v2809_v15 = vunpack.i.l.bf16 %v3872_v28 }
  0xc3   : > { %4814 = vst [vmem:[#allocation10_spill] sm:$0xff] %v3874_v11  ;;  %3097 = vrot.lane.b32.xlu1 %v3647_v23, %s3394_s26  ;;  %v3131_v23 = vpack.i.bf16 %v582_v58, %v581_v10  ;;  %v505_v10 = vld [vmem:[#allocation2 + $0x141] sm:$0xff]  ;;  %v2805_v58 = vunpack.i.h.bf16 %v2803_v17 }
  0xc4   : > { %3102 = vrot.lane.b32.xlu0 %v3628_v50, %s3394_s26 }
  0xc5   : > { %v3880_v63 = vpop.permute.xlu1 %2817 }
  0xc6   : > { %4815 = vst [vmem:[#allocation11_spill] sm:$0xff] %v3880_v63  ;;  %v3882_v25 = vpop.permute.xlu0 %2822 }
  0xc7   : > { %3107 = vrot.lane.b32.xlu1 %v3651_v24, %s3394_s26 }
  0xc8   : > { %3112 = vrot.lane.b32.xlu0 %v3692_v54, %s3395_s29  ;;  %v3141_v54 = vpack.i.bf16 %v584_v62, %v583_v43 }
  0xc9   : > { %v3888_v49 = vpop.permute.xlu1 %2827 }
  0xca   : > { %4816 = vst [vmem:[#allocation12_spill] sm:$0xff] %v3888_v49  ;;  %v3890_v5 = vpop.permute.xlu0 %2832 }
  0xcb   : > { %3117 = vrot.lane.b32.xlu1 %v3749_v41, %s3395_s29 }
  0xcc   : > { %3122 = vrot.lane.b32.xlu0 %v3698_v60, %s3395_s29 }
  0xcd   : > { %v3896_v8 = vpop.permute.xlu1 %2837 }
  0xce   : > { %v3898_v29 = vpop.permute.xlu0 %2842 }
  0xcf   : > { %3127 = vrot.lane.b32.xlu1 %v3754_v42, %s3395_s29 }
  0xd0   : > { %3132 = vrot.lane.b32.xlu0 %v3131_v23, %s3396_s8  ;;  %v2804_v23 = vunpack.i.l.bf16 %v2803_v17 }
  0xd1   : > { %v3903_v49 = vpop.permute.xlu1 %2847 }
  0xd2   : > { %v3905_v6 = vpop.permute.xlu0 %2852  ;;  %v1693_v17 = vsel %vm199_vm0, %v3756_v45, %v2804_v23  ;;  %v2759_v23 = vunpack.i.l.bf16 %v3834_v16 }
  0xd3   : > { %4817 = vst [vmem:[#allocation13_spill] sm:$0xff] %v3905_v6  ;;  %3137 = vrot.lane.b32.xlu1 %v3605_v26, %s3396_s8  ;;  %v504_v26 = vld [vmem:[#allocation2 + $0x139] sm:$0xff] }
  0xd4   : > { %3142 = vrot.lane.b32.xlu0 %v3141_v54, %s3396_s8 }
  0xd5   : > { %v3910_v60 = vpop.permute.xlu1 %2857 }
  0xd6   : > { %4818 = vst [vmem:[#allocation14_spill] sm:$0xff] %v3910_v60  ;;  %v3912_v41 = vpop.permute.xlu0 %2862 }
  0xd7   : > { %4819 = vst [vmem:[#allocation15_spill] sm:$0xff] %v3912_v41  ;;  %3147 = vrot.lane.b32.xlu1 %v3609_v31, %s3396_s8  ;;  %v490_v31 = vld [vmem:[#allocation2 + $0x91] sm:$0xff]  ;;  %v491_v41 = vld [vmem:[#allocation2 + $0x99] sm:$0xff] }
  0xd8   : > { %3152 = vrot.lane.b32.xlu0 %v3628_v50, %s3397_s9  ;;  %v3176_v50 = vpack.i.bf16 %v505_v10, %v504_v26  ;;  %v3937_v60 = vpack.i.bf16 %v491_v41, %v490_v31  ;;  %v506_v26 = vld [vmem:[#allocation2 + $0x151] sm:$0xff]  ;;  %v507_v10 = vld [vmem:[#allocation2 + $0x159] sm:$0xff]  ;;  %v2764_v31 = vunpack.i.l.bf16 %v3836_v46 }
  0xd9   : > { %v3918_v42 = vpop.permute.xlu1 %2867  ;;  %v3952_v41 = vpack.i.bf16 %v507_v10, %v506_v26  ;;  %v2840_v10 = vunpack.i.h.bf16 %v3896_v8 }
  0xda   : > { %4820 = vst [vmem:[#allocation16_spill] sm:$0xff] %v3918_v42  ;;  %v3920_v62 = vpop.permute.xlu0 %2872  ;;  %v2810_v42 = vunpack.i.h.bf16 %v3872_v28 }
  0xdb   : > { %3157 = vrot.lane.b32.xlu1 %v3651_v24, %s3397_s9  ;;  %v1694_v24 = vsel %vm199_vm0, %v3758_v18, %v2805_v58  ;;  %v2760_v58 = vunpack.i.h.bf16 %v3834_v16 }
  0xdc   : > { %3162 = vrot.lane.b32.xlu0 %v3632_v56, %s3397_s9  ;;  %v1696_v45 = vsel %vm199_vm0, %v3762_v21, %v2810_v42  ;;  %v2754_v21 = vunpack.i.l.bf16 %v3825_v7 }
  0xdd   : > { %v3926_v43 = vpop.permute.xlu1 %2877  ;;  %v1676_v26 = vsel %vm199_vm0, %v3686_v53, %v2760_v58 }
  0xde   : > { %v2883_v14 = vpop.permute.xlu0 %2882  ;;  %v1709_v58 = vsel %vm1697_vm3, %v1676_v26, %v2840_v10 }
  0xdf   : > { %v2885_v12 = vunpack.i.h.bf16 %v2883_v14  ;;  %v2884_v13 = vunpack.i.l.bf16 %v2883_v14  ;;  %3167 = vrot.lane.b32.xlu1 %v3655_v32, %s3397_s9 }
  0xe0   : > { %3172 = vrot.lane.b32.xlu0 %v3141_v54, %s3393_s25  ;;  %v1695_v54 = vsel %vm199_vm0, %v3760_v19, %v2809_v15  ;;  %v522_v15 = vld [vmem:[#allocation2 + $0x92] sm:$0xff]  ;;  %v523_v19 = vld [vmem:[#allocation2 + $0x9a] sm:$0xff] }
  0xe1   : > { %v3940_v28 = vsel %vm1697_vm3, %v1693_v17, %v2884_v13  ;;  %v3943_v14 = vsel %vm1697_vm3, %v1694_v24, %v2885_v12  ;;  %v2888_v6 = vpop.permute.xlu1 %2887  ;;  %v3978_v24 = vpack.i.bf16 %v523_v19, %v522_v15  ;;  %v1673_v17 = vsel %vm199_vm0, %v3680_v48, %v2754_v21 }
  0xe2   : > { %v2890_v63 = vunpack.i.h.bf16 %v2888_v6  ;;  %v2889_v11 = vunpack.i.l.bf16 %v2888_v6  ;;  %v3945_v18 = vpop.permute.xlu0 %2892  ;;  %v2755_v6 = vunpack.i.h.bf16 %v3825_v7  ;;  %v2834_v7 = vunpack.i.l.bf16 %v3890_v5 }
  0xe3   : > { %3177 = vrot.lane.b32.xlu1 %v3176_v50, %s3393_s25  ;;  %v2835_v50 = vunpack.i.h.bf16 %v3890_v5  ;;  %v1675_v5 = vsel %vm199_vm0, %v3684_v52, %v2759_v23  ;;  %v1677_v48 = vsel %vm199_vm0, %v3700_v61, %v2764_v31  ;;  %v2845_v21 = vunpack.i.h.bf16 %v3898_v29 }
  0xe4   : > { %v3955_v13 = vsel %vm1697_vm3, %v1696_v45, %v2890_v63  ;;  %v3958_v12 = vsel %vm1697_vm3, %v1695_v54, %v2889_v11  ;;  %3182 = vrot.lane.b32.xlu0 %v3937_v60, %s3393_s25  ;;  %v2765_v11 = vunpack.i.h.bf16 %v3836_v46  ;;  %v1674_v16 = vsel %vm199_vm0, %v3682_v51, %v2755_v6 }
  0xe5   : > { %v3964_v42 = vpop.permute.xlu1 %2897  ;;  %v1706_v53 = vsel %vm1697_vm3, %v1673_v17, %v2834_v7  ;;  %v1707_v52 = vsel %vm1697_vm3, %v1674_v16, %v2835_v50  ;;  %v2769_v61 = vunpack.i.l.bf16 %v3842_v55  ;;  %v2850_v50 = vunpack.i.h.bf16 %v3903_v49 }
  0xe6   : > { %v3968_v63 = vpop.permute.xlu0 %2902  ;;  %v1678_v51 = vsel %vm199_vm0, %v3702_v0, %v2765_v11  ;;  %v2770_v0 = vunpack.i.h.bf16 %v3842_v55  ;;  %v2849_v7 = vunpack.i.l.bf16 %v3903_v49 }
  0xe7   : > { %4821 = vst [vmem:[#allocation17_spill] sm:$0xff] %v3968_v63  ;;  %3187 = vrot.lane.b32.xlu1 %v3952_v41, %s3393_s25 }
  0xe8   : > { %3192 = vrot.lane.b32.xlu0 %v3632_v56, %s3394_s26  ;;  %v2839_v56 = vunpack.i.l.bf16 %v3896_v8  ;;  %v2844_v8 = vunpack.i.l.bf16 %v3898_v29 }
  0xe9   : > { %v3984_v46 = vpop.permute.xlu1 %2907 }
  0xea   : > { %4822 = vst [vmem:[#allocation18_spill] sm:$0xff] %v3984_v46  ;;  %v2913_v45 = vpop.permute.xlu0 %2912  ;;  %v1708_v23 = vsel %vm1697_vm3, %v1675_v5, %v2839_v56  ;;  %v1710_v17 = vsel %vm1697_vm3, %v1677_v48, %v2844_v8  ;;  %v1680_v56 = vsel %vm199_vm0, %v3706_v2, %v2770_v0  ;;  %v587_v2 = vld [vmem:[#allocation2 + $0xa9] sm:$0xff]  ;;  %v588_v8 = vld [vmem:[#allocation2 + $0xb1] sm:$0xff]  ;;  %v2795_v0 = vunpack.i.h.bf16 %v3860_v30 }
  0xeb   : > { %v2915_v54 = vunpack.i.h.bf16 %v2913_v45  ;;  %v2914_v6 = vunpack.i.l.bf16 %v2913_v45  ;;  %3197 = vrot.lane.b32.xlu1 %v3655_v32, %s3394_s26  ;;  %v1711_v45 = vsel %vm1697_vm3, %v1678_v51, %v2845_v21  ;;  %v1679_v51 = vsel %vm199_vm0, %v3704_v1, %v2769_v61 }
  0xec   : > { %3202 = vrot.lane.b32.xlu0 %v3978_v24, %s3394_s26  ;;  %v2794_v61 = vunpack.i.l.bf16 %v3860_v30  ;;  %v1690_v30 = vsel %vm199_vm0, %v3740_v35, %v2795_v0 }
  0xed   : > { %v4007_v15 = vsel %vm1730_vm4, %v1706_v53, %v2914_v6  ;;  %v4010_v32 = vsel %vm1730_vm4, %v1707_v52, %v2915_v54  ;;  %v2918_v19 = vpop.permute.xlu1 %2917  ;;  %v1713_v53 = vsel %vm1697_vm3, %v1680_v56, %v2850_v50 }
  0xee   : > { %4823 = vst [vmem:[#allocation19_spill] sm:$0xff] %v4007_v15  ;;  %4824 = vst [vmem:[#allocation20_spill] sm:$0xff] %v4010_v32  ;;  %v2920_v11 = vunpack.i.h.bf16 %v2918_v19  ;;  %v2919_v29 = vunpack.i.l.bf16 %v2918_v19  ;;  %v2923_v31 = vpop.permute.xlu0 %2922  ;;  %v1689_v50 = vsel %vm199_vm0, %v3738_v34, %v2794_v61  ;;  %v4846_v32 = vld [vmem:[#allocation4_spill] sm:$0xff] }
  0xef   : > { %v2925_v16 = vunpack.i.h.bf16 %v2923_v31  ;;  %v2924_v55 = vunpack.i.l.bf16 %v2923_v31  ;;  %3207 = vrot.lane.b32.xlu1 %v3659_v33, %s3394_s26 }
  0xf0   : > { %v4021_v26 = vsel %vm1730_vm4, %v1708_v23, %v2919_v29  ;;  %v4024_v5 = vsel %vm1730_vm4, %v1709_v58, %v2920_v11  ;;  %3212 = vrot.lane.b32.xlu0 %v3712_v3, %s3395_s29  ;;  %v1712_v3 = vsel %vm1697_vm3, %v1679_v51, %v2849_v7  ;;  %v604_v58 = vld [vmem:[#allocation2 + $0x171] sm:$0xff]  ;;  %v2875_v23 = vunpack.i.h.bf16 %v3920_v62 }
  0xf1   : > { %4825 = vst [vmem:[#allocation21_spill] sm:$0xff] %v4021_v26  ;;  %4826 = vst [vmem:[#allocation22_spill] sm:$0xff] %v4024_v5  ;;  %v4029_v49 = vsel %vm1730_vm4, %v1710_v17, %v2924_v55  ;;  %v4032_v10 = vsel %vm1730_vm4, %v1711_v45, %v2925_v16  ;;  %v2928_v33 = vpop.permute.xlu1 %2927  ;;  %v2874_v11 = vunpack.i.l.bf16 %v3920_v62  ;;  %v2799_v7 = vunpack.i.l.bf16 %v3866_v44  ;;  %v633_v16 = vld [vmem:[#allocation2 + $0x152] sm:$0xff]  ;;  %v634_v55 = vld [vmem:[#allocation2 + $0x15a] sm:$0xff] }
  0xf2   : > { %4827 = vst [vmem:[#allocation23_spill] sm:$0xff] %v4029_v49  ;;  %4828 = vst [vmem:[#allocation24_spill] sm:$0xff] %v4032_v10  ;;  %v2930_v48 = vunpack.i.h.bf16 %v2928_v33  ;;  %v2929_v54 = vunpack.i.l.bf16 %v2928_v33  ;;  %v4038_v6 = vpop.permute.xlu0 %2932  ;;  %v2879_v17 = vunpack.i.l.bf16 %v3926_v43  ;;  %v1723_v34 = vsel %vm1697_vm3, %v1690_v30, %v2875_v23  ;;  %v636_v30 = vld [vmem:[#allocation2 + $0x172] sm:$0xff]  ;;  %v4845_v26 = vld [vmem:[#allocation14_spill] sm:$0xff] }
  0xf3   : > { %3217 = vrot.lane.b32.xlu1 %v3768_v22, %s3395_s29  ;;  %v603_v22 = vld [vmem:[#allocation2 + $0x169] sm:$0xff]  ;;  %v1722_v35 = vsel %vm1697_vm3, %v1689_v50, %v2874_v11  ;;  %v2860_v5 = vunpack.i.h.bf16 %v4845_v26 }
  0xf4   : > { %v4045_v52 = vsel %vm1730_vm4, %v1712_v3, %v2929_v54  ;;  %v4048_v21 = vsel %vm1730_vm4, %v1713_v53, %v2930_v48  ;;  %3222 = vrot.lane.b32.xlu0 %v3718_v9, %s3395_s29  ;;  %v4064_v9 = vpack.i.bf16 %v588_v8, %v587_v2  ;;  %v4068_v31 = vpack.i.bf16 %v604_v58, %v603_v22  ;;  %v619_v48 = vld [vmem:[#allocation2 + $0xaa] sm:$0xff]  ;;  %v620_v54 = vld [vmem:[#allocation2 + $0xb2] sm:$0xff] }
  0xf5   : > { %4829 = vst [vmem:[#allocation25_spill] sm:$0xff] %v4045_v52  ;;  %4830 = vst [vmem:[#allocation26_spill] sm:$0xff] %v4048_v21  ;;  %v4052_v1 = vpop.permute.xlu1 %2937  ;;  %v1691_v53 = vsel %vm199_vm0, %v3742_v38, %v2799_v7  ;;  %v4106_v38 = vpack.i.bf16 %v620_v54, %v619_v48  ;;  %v635_v11 = vld [vmem:[#allocation2 + $0x16a] sm:$0xff]  ;;  %v510_v48 = vld [vmem:[#allocation2 + $0x181] sm:$0xff] }
  0xf6   : > { %v4056_v19 = vpop.permute.xlu0 %2942  ;;  %v1724_v61 = vsel %vm1697_vm3, %v1691_v53, %v2879_v17  ;;  %v4121_v17 = vpack.i.bf16 %v636_v30, %v635_v11  ;;  %v511_v54 = vld [vmem:[#allocation2 + $0x189] sm:$0xff]  ;;  %v4182_v52 = vld [vmem:[#allocation2 + $0x1a1] sm:$0xff] }
  0xf7   : > { %4831 = vst [vmem:[#allocation27_spill] sm:$0xff] %v4056_v19  ;;  %3227 = vrot.lane.b32.xlu1 %v3774_v27, %s3395_s29  ;;  %v2800_v27 = vunpack.i.h.bf16 %v3866_v44  ;;  %v542_v53 = vld [vmem:[#allocation2 + $0x182] sm:$0xff]  ;;  %v4843_v49 = vld [vmem:[#allocation11_spill] sm:$0xff] }
  0xf8   : > { %3232 = vrot.lane.b32.xlu0 %v3937_v60, %s3396_s8  ;;  %v2880_v60 = vunpack.i.h.bf16 %v3926_v43  ;;  %v3256_v43 = vpack.i.bf16 %v634_v55, %v633_v16  ;;  %v4849_v19 = vld [vmem:[#allocation5_spill] sm:$0xff] }
  0xf9   : > { %v4066_v29 = vpop.permute.xlu1 %2947 }
  0xfa   : > { %4832 = vst [vmem:[#allocation28_spill] sm:$0xff] %v4066_v29  ;;  %v2953_v62 = vpop.permute.xlu0 %2952 }
  0xfb   : > { %v2955_v45 = vunpack.i.h.bf16 %v2953_v62  ;;  %v2954_v33 = vunpack.i.l.bf16 %v2953_v62  ;;  %3237 = vrot.lane.b32.xlu1 %v3952_v41, %s3396_s8  ;;  %v1692_v41 = vsel %vm199_vm0, %v3744_v39, %v2800_v27  ;;  %v2744_v62 = vunpack.i.l.bf16 %v3813_v59 }
  0xfc   : > { %3242 = vrot.lane.b32.xlu0 %v4064_v9, %s3396_s8  ;;  %v1725_v0 = vsel %vm1697_vm3, %v1692_v41, %v2880_v60  ;;  %v527_v41 = vld [vmem:[#allocation2 + $0xca] sm:$0xff] }
  0xfd   : > { %v4085_v44 = vsel %vm1730_vm4, %v1722_v35, %v2954_v33  ;;  %v4088_v56 = vsel %vm1730_vm4, %v1723_v34, %v2955_v45  ;;  %v2958_v51 = vpop.permute.xlu1 %2957  ;;  %v494_v35 = vld [vmem:[#allocation2 + $0xc1] sm:$0xff]  ;;  %v495_v34 = vld [vmem:[#allocation2 + $0xc9] sm:$0xff] }
  0xfe   : > { %4833 = vst [vmem:[#allocation29_spill] sm:$0xff] %v4085_v44  ;;  %4834 = vst [vmem:[#allocation30_spill] sm:$0xff] %v4088_v56  ;;  %v2960_v3 = vunpack.i.h.bf16 %v2958_v51  ;;  %v2959_v2 = vunpack.i.l.bf16 %v2958_v51  ;;  %v2963_v8 = vpop.permute.xlu0 %2962  ;;  %v1669_v51 = vsel %vm199_vm0, %v3671_v40, %v2744_v62  ;;  %v4148_v40 = vld [vmem:[#allocation2 + $0x180] sm:$0xff]  ;;  %v4154_v30 = vpack.i.bf16 %v495_v34, %v494_v35  ;;  %v4158_v62 = vld [vmem:[#allocation2 + $0xd8] sm:$0xff] }
  0xff   : > { %v2965_v22 = vunpack.i.h.bf16 %v2963_v8  ;;  %v2964_v58 = vunpack.i.l.bf16 %v2963_v8  ;;  %3247 = vrot.lane.b32.xlu1 %v4068_v31, %s3396_s8  ;;  %v4173_v35 = vld [vmem:[#allocation2 + $0xd9] sm:$0xff]  ;;  %v2740_v34 = vunpack.i.h.bf16 %v3815_v4  ;;  %v2859_v56 = vunpack.i.l.bf16 %v4845_v26 }
 0x100   : > { %v4099_v23 = vsel %vm1730_vm4, %v1724_v61, %v2959_v2  ;;  %v4102_v39 = vsel %vm1730_vm4, %v1725_v0, %v2960_v3  ;;  %3252 = vrot.lane.b32.xlu0 %v3978_v24, %s3397_s9  ;;  %v2824_v24 = vunpack.i.l.bf16 %v3882_v25  ;;  %v543_v3 = vld [vmem:[#allocation2 + $0x18a] sm:$0xff]  ;;  %v4144_v0 = vld [vmem:[#allocation2 + $0xc0] sm:$0xff]  ;;  %v2894_v44 = vunpack.i.l.bf16 %v3945_v18 }
 0x101   : > { %4835 = vst [vmem:[#allocation31_spill] sm:$0xff] %v4099_v23  ;;  %4836 = vst [vmem:[#allocation32_spill] sm:$0xff] %v4102_v39  ;;  %v4110_v50 = vsel %vm1730_vm4, %v3940_v28, %v2964_v58  ;;  %v4114_v27 = vsel %vm1730_vm4, %v3943_v14, %v2965_v22  ;;  %v2968_v7 = vpop.permute.xlu1 %2967  ;;  %v2904_v28 = vunpack.i.l.bf16 %v3968_v63  ;;  %v4146_v61 = vld [vmem:[#allocation2 + $0xc8] sm:$0xff]  ;;  %v2735_v22 = vunpack.i.h.bf16 %v3805_v57  ;;  %v352_v58 = vld [vmem:[#allocation2] sm:$0xff] }
 0x102   : > { %4837 = vst [vmem:[#allocation33_spill] sm:$0xff] %v4110_v50  ;;  %4838 = vst [vmem:[#allocation34_spill] sm:$0xff] %v4114_v27  ;;  %v2970_v16 = vunpack.i.h.bf16 %v2968_v7  ;;  %v2969_v55 = vunpack.i.l.bf16 %v2968_v7  ;;  %v4117_v60 = vpop.permute.xlu0 %2972  ;;  %v1702_v2 = vsel %vm1697_vm3, %v1669_v51, %v2824_v24  ;;  %v4156_v7 = vld [vmem:[#allocation2 + $0x188] sm:$0xff]  ;;  %v2739_v24 = vunpack.i.l.bf16 %v3815_v4 }
 0x103   : > { %3257 = vrot.lane.b32.xlu1 %v3256_v43, %s3397_s9  ;;  %v1735_v11 = vsel %vm1730_vm4, %v1702_v2, %v2904_v28  ;;  %v4169_v2 = vld [vmem:[#allocation2 + $0x198] sm:$0xff]  ;;  %v4190_v21 = vpack.i.bf16 %v543_v3, %v542_v53  ;;  %v2779_v3 = vunpack.i.l.bf16 %v3850_v20  ;;  %v2819_v39 = vunpack.i.l.bf16 %v4843_v49 }
 0x104   : > { %v4126_v45 = vsel %vm1730_vm4, %v3958_v12, %v2969_v55  ;;  %v4130_v14 = vsel %vm1730_vm4, %v3955_v13, %v2970_v16  ;;  %3262 = vrot.lane.b32.xlu0 %v4106_v38, %s3397_s9  ;;  %v526_v12 = vld [vmem:[#allocation2 + $0xc2] sm:$0xff]  ;;  %v2734_v55 = vunpack.i.l.bf16 %v3805_v57  ;;  %v4180_v57 = vld [vmem:[#allocation2 + $0x199] sm:$0xff] }
 0x105   : > { %4839 = vst [vmem:[#allocation35_spill] sm:$0xff] %v4126_v45  ;;  %4840 = vst [vmem:[#allocation36_spill] sm:$0xff] %v4130_v14  ;;  %v4134_v33 = vpop.permute.xlu1 %2977  ;;  %v353_v13 = vld [vmem:[#allocation2 + $0x8] sm:$0xff]  ;;  %v4160_v16 = vld [vmem:[#allocation2 + $0xe0] sm:$0xff]  ;;  %v1683_v26 = vsel %vm199_vm0, %v4849_v19, %v2779_v3 }
 0x106   : > { %v4138_v43 = vpop.permute.xlu0 %2982  ;;  %v4178_v45 = vld [vmem:[#allocation2 + $0xe1] sm:$0xff]  ;;  %v1666_v27 = vsel %vm199_vm0, %v353_v13, %v2735_v22 }
 0x107   : > { %v2984_v8 = vunpack.i.l.bf16 %v4138_v43  ;;  %3267 = vrot.lane.b32.xlu1 %v4121_v17, %s3397_s9  ;;  %v4214_v22 = vld [vmem:[#allocation2 + $0xe2] sm:$0xff] }
 0x108   : > { %3272 = vrot.lane.b32.xlu0 %v4064_v9, %s3393_s25  ;;  %v4171_v9 = vld [vmem:[#allocation2 + $0x1a0] sm:$0xff]  ;;  %v4842_v13 = vld [vmem:[#allocation10_spill] sm:$0xff] }
 0x109   : > { %v4165_v51 = vsel %vm1763_vm5, %v1735_v11, %v2984_v8  ;;  %v4167_v28 = vpop.permute.xlu1 %2987  ;;  %v4186_v8 = vpack.i.bf16 %v511_v54, %v510_v48  ;;  %v4188_v11 = vpack.i.bf16 %v527_v41, %v526_v12  ;;  %v4203_v54 = vld [vmem:[#allocation2 + $0xda] sm:$0xff]  ;;  %v1665_v12 = vsel %vm199_vm0, %v352_v58, %v2734_v55  ;;  %v4218_v48 = vld [vmem:[#allocation2 + $0x1a2] sm:$0xff] }
 0x10a   : > { %4841 = vst [vmem:[#allocation37_spill] sm:$0xff] %v4165_v51  ;;  %v4176_v14 = vpop.permute.xlu0 %2992  ;;  %v1667_v41 = vsel %vm199_vm0, %v3661_v36, %v2739_v24  ;;  %v1668_v58 = vsel %vm199_vm0, %v3663_v37, %v2740_v34  ;;  %v2775_v55 = vunpack.i.h.bf16 %v3844_v47  ;;  %v2774_v36 = vunpack.i.l.bf16 %v3844_v47  ;;  %v4844_v34 = vld [vmem:[#allocation13_spill] sm:$0xff]  ;;  %v4848_v47 = vld [vmem:[#allocation6_spill] sm:$0xff] }
 0x10b   : > { %3277 = vrot.lane.b32.xlu1 %v4068_v31, %s3393_s25  ;;  %v4216_v31 = vld [vmem:[#allocation2 + $0x19a] sm:$0xff]  ;;  %v2780_v24 = vunpack.i.h.bf16 %v3850_v20  ;;  %v2815_v4 = vunpack.i.h.bf16 %v4842_v13  ;;  %v2814_v10 = vunpack.i.l.bf16 %v4842_v13  ;;  %v2820_v37 = vunpack.i.h.bf16 %v4843_v49 }
 0x10c   : > { %3282 = vrot.lane.b32.xlu0 %v4154_v30, %s3393_s25  ;;  %v2854_v23 = vunpack.i.l.bf16 %v4844_v34  ;;  %v2855_v13 = vunpack.i.h.bf16 %v4844_v34  ;;  %v1682_v15 = vsel %vm199_vm0, %v4846_v32, %v2775_v55  ;;  %v2895_v20 = vunpack.i.h.bf16 %v3945_v18 }
 0x10d   : > { %v4208_v53 = vpop.permute.xlu1 %2997  ;;  %v1684_v29 = vsel %vm199_vm0, %v4848_v47, %v2780_v24  ;;  %v1699_v46 = vsel %vm1697_vm3, %v1666_v27, %v2815_v4  ;;  %v1698_v63 = vsel %vm1697_vm3, %v1665_v12, %v2814_v10  ;;  %v1700_v32 = vsel %vm1697_vm3, %v1667_v41, %v2819_v39 }
 0x10e   : > { %v4225_v50 = vpop.permute.xlu0 %3002  ;;  %v1701_v55 = vsel %vm1697_vm3, %v1668_v58, %v2820_v37  ;;  %v2900_v18 = vunpack.i.h.bf16 %v3964_v42  ;;  %v2899_v24 = vunpack.i.l.bf16 %v3964_v42  ;;  %v1715_v19 = vsel %vm1697_vm3, %v1682_v15, %v2855_v13 }
 0x10f   : > { %3287 = vrot.lane.b32.xlu1 %v4186_v8, %s3393_s25  ;;  %v1717_v10 = vsel %vm1697_vm3, %v1684_v29, %v2860_v5  ;;  %v1716_v39 = vsel %vm1697_vm3, %v1683_v26, %v2859_v56  ;;  %v1731_v27 = vsel %vm1730_vm4, %v1698_v63, %v2894_v44  ;;  %v1732_v4 = vsel %vm1730_vm4, %v1699_v46, %v2895_v20 }
 0x110   : > { %3292 = vrot.lane.b32.xlu0 %v4106_v38, %s3394_s26  ;;  %v4847_v38 = vld [vmem:[#allocation3_spill] sm:$0xff]  ;;  %v2939_v42 = vunpack.i.l.bf16 %v4052_v1  ;;  %v2940_v15 = vunpack.i.h.bf16 %v4052_v1  ;;  %v2975_v5 = vunpack.i.h.bf16 %v4117_v60  ;;  %v2974_v29 = vunpack.i.l.bf16 %v4117_v60 }
 0x111   : > { %v4245_v49 = vpop.permute.xlu1 %3007  ;;  %v1681_v51 = vsel %vm199_vm0, %v4847_v38, %v2774_v36  ;;  %v2979_v63 = vunpack.i.l.bf16 %v4134_v33  ;;  %v1733_v46 = vsel %vm1730_vm4, %v1700_v32, %v2899_v24  ;;  %v1734_v44 = vsel %vm1730_vm4, %v1701_v55, %v2900_v18 }
 0x112   : > { %v4254_v34 = vpop.permute.xlu0 %3012  ;;  %v1714_v36 = vsel %vm1697_vm3, %v1681_v51, %v2854_v23  ;;  %v2935_v23 = vunpack.i.h.bf16 %v4038_v6  ;;  %v2934_v51 = vunpack.i.l.bf16 %v4038_v6  ;;  %v2980_v6 = vunpack.i.h.bf16 %v4134_v33 }
 0x113   : > { %3297 = vrot.lane.b32.xlu1 %v4121_v17, %s3394_s26  ;;  %v2985_v56 = vunpack.i.h.bf16 %v4138_v43  ;;  %v4850_v1 = vpack.i.bf16 %v4146_v61, %v4144_v0  ;;  %v2990_v60 = vunpack.i.h.bf16 %v4167_v28  ;;  %v2989_v41 = vunpack.i.l.bf16 %v4167_v28 }
 0x114   : > { %3302 = vrot.lane.b32.xlu0 %v4188_v11, %s3394_s26  ;;  %v2994_v3 = vunpack.i.l.bf16 %v4176_v14  ;;  %v2999_v58 = vunpack.i.l.bf16 %v4208_v53  ;;  %v1747_v47 = vsel %vm1730_vm4, %v1714_v36, %v2934_v51  ;;  %v1748_v33 = vsel %vm1730_vm4, %v1715_v19, %v2935_v23 }
 0x115   : > { %v4273_v17 = vpop.permute.xlu1 %3017  ;;  %v1749_v43 = vsel %vm1730_vm4, %v1716_v39, %v2939_v42  ;;  %v3000_v20 = vunpack.i.h.bf16 %v4208_v53  ;;  %v1750_v0 = vsel %vm1730_vm4, %v1717_v10, %v2940_v15  ;;  %v1764_v61 = vsel %vm1763_vm5, %v1731_v27, %v2974_v29 }
 0x116   : > { %v4279_v12 = vpop.permute.xlu0 %3022  ;;  %v1765_v28 = vsel %vm1763_vm5, %v1732_v4, %v2975_v5  ;;  %v1766_v38 = vsel %vm1763_vm5, %v1733_v46, %v2979_v63  ;;  %v4851_v26 = vpack.i.bf16 %v4156_v7, %v4148_v40  ;;  %v1767_v32 = vsel %vm1763_vm5, %v1734_v44, %v2980_v6 }
 0x117   : > { %3307 = vrot.lane.b32.xlu1 %v4190_v21, %s3394_s26  ;;  %v1780_v53 = vsel %vm1763_vm5, %v1747_v47, %v2985_v56  ;;  %v3005_v55 = vunpack.i.h.bf16 %v4225_v50  ;;  %v3004_v36 = vunpack.i.l.bf16 %v4225_v50  ;;  %v4852_v18 = vpack.i.bf16 %v4160_v16, %v4158_v62 }
 0x118   : > { %3312 = vrot.lane.b32.xlu0 %v4850_v1, %s3395_s29  ;;  %v1781_v24 = vsel %vm1763_vm5, %v1748_v33, %v2989_v41  ;;  %v1782_v19 = vsel %vm1763_vm5, %v1749_v43, %v2990_v60  ;;  %v1783_v40 = vsel %vm1763_vm5, %v1750_v0, %v2994_v3  ;;  %v1797_v7 = vsel %vm1796_vm6, %v1764_v61, %v2999_v58 }
 0x119   : > { %v3028_v37 = vpop.permute.xlu1 %3027  ;;  %v1798_v39 = vsel %vm1796_vm6, %v1765_v28, %v3000_v20  ;;  %v3010_v27 = vunpack.i.h.bf16 %v4245_v49  ;;  %v3009_v50 = vunpack.i.l.bf16 %v4245_v49  ;;  %v3014_v4 = vunpack.i.l.bf16 %v4254_v34 }
 0x11a   : > { %v4303_v13 = vpop.permute.xlu0 %3032  ;;  %v3015_v16 = vunpack.i.h.bf16 %v4254_v34  ;;  %v3020_v23 = vunpack.i.h.bf16 %v4273_v17  ;;  %v3019_v51 = vunpack.i.l.bf16 %v4273_v17  ;;  %v3024_v42 = vunpack.i.l.bf16 %v4279_v12 }
 0x11b   : > { %3317 = vrot.lane.b32.xlu1 %v4851_v26, %s3395_s29  ;;  %v4853_v15 = vpack.i.bf16 %v4171_v9, %v4169_v2  ;;  %v1813_v5 = vsel %vm1796_vm6, %v1780_v53, %v3004_v36  ;;  %v1814_v49 = vsel %vm1796_vm6, %v1781_v24, %v3005_v55  ;;  %v3025_v29 = vunpack.i.h.bf16 %v4279_v12 }
 0x11c   : > { %3322 = vrot.lane.b32.xlu0 %v4852_v18, %s3395_s29  ;;  %v3029_v63 = vunpack.i.l.bf16 %v3028_v37  ;;  %v3030_v34 = vunpack.i.h.bf16 %v3028_v37  ;;  %v3034_v17 = vunpack.i.l.bf16 %v4303_v13  ;;  %v1799_v2 = vsel %vm1796_vm6, %v1766_v38, %v3009_v50 }
 0x11d   : > { %v3038_v10 = vpop.permute.xlu1 %3037  ;;  %v1800_v9 = vsel %vm1796_vm6, %v1767_v32, %v3010_v27  ;;  %v1815_v56 = vsel %vm1796_vm6, %v1782_v19, %v3014_v4  ;;  %v1816_v12 = vsel %vm1796_vm6, %v1783_v40, %v3015_v16  ;;  %v1830_v41 = vsel %vm1829_vm7, %v1797_v7, %v3019_v51 }
 0x11e   : > { %v3043_v62 = vpop.permute.xlu0 %3042  ;;  %v3040_v46 = vunpack.i.h.bf16 %v3038_v10  ;;  %v3039_v44 = vunpack.i.l.bf16 %v3038_v10  ;;  %v1846_v3 = vsel %vm1829_vm7, %v1813_v5, %v3024_v42  ;;  %v1847_v58 = vsel %vm1829_vm7, %v1814_v49, %v3025_v29 }
 0x11f   : > { %3327 = vrot.lane.b32.xlu1 %v4853_v15, %s3395_s29  ;;  %v3044_v1 = vunpack.i.l.bf16 %v3043_v62  ;;  %v1832_v37 = vsel %vm1829_vm7, %v1799_v2, %v3029_v63  ;;  %v3035_v47 = vunpack.i.h.bf16 %v4303_v13  ;;  %v3045_v33 = vunpack.i.h.bf16 %v3043_v62 }
 0x120   : > { %3332 = vrot.lane.b32.xlu0 %v4154_v30, %s3396_s8  ;;  %v1831_v30 = vsel %vm1829_vm7, %v1798_v39, %v3020_v23  ;;  %v4854_v43 = vpack.i.bf16 %v4178_v45, %v4173_v35  ;;  %v1833_v20 = vsel %vm1829_vm7, %v1800_v9, %v3030_v34  ;;  %v1848_v0 = vsel %vm1829_vm7, %v1815_v56, %v3034_v17  ;;  %v4858_v56 = vld [vmem:[#allocation7_spill] sm:$0xff] }
 0x121   : > { %v3048_v6 = vpop.permute.xlu1 %3047  ;;  %v1863_v28 = vsel %vm1862_vm8, %v1830_v41, %v3039_v44  ;;  %v1879_v13 = vsel %vm1862_vm8, %v1846_v3, %v3044_v1  ;;  %v4855_v35 = vpack.i.bf16 %v4182_v52, %v4180_v57  ;;  %v1880_v7 = vsel %vm1862_vm8, %v1847_v58, %v3045_v33 }
 0x122   : > { %v3053_v60 = vpop.permute.xlu0 %3052  ;;  %v3049_v38 = vunpack.i.l.bf16 %v3048_v6  ;;  %v3050_v55 = vunpack.i.h.bf16 %v3048_v6  ;;  %v1849_v10 = vsel %vm1829_vm7, %v1816_v12, %v3035_v47  ;;  %v4856_v63 = vpack.i.bf16 %v4214_v22, %v4203_v54  ;;  %v4859_v12 = vld [vmem:[#allocation8_spill] sm:$0xff] }
 0x123   : > { %3337 = vrot.lane.b32.xlu1 %v4186_v8, %s3396_s8  ;;  %v1864_v8 = vsel %vm1862_vm8, %v1831_v30, %v3040_v46  ;;  %v3054_v36 = vunpack.i.l.bf16 %v3053_v60  ;;  %v3055_v24 = vunpack.i.h.bf16 %v3053_v60  ;;  %v4857_v2 = vpack.i.bf16 %v4218_v48, %v4216_v31  ;;  %v4860_v31 = vld [vmem:[#allocation9_spill] sm:$0xff]  ;;  %v4861_v47 = vld [vmem:[#allocation12_spill] sm:$0xff] }
 0x124   : > { %3342 = vrot.lane.b32.xlu0 %v4854_v43, %s3396_s8  ;;  %v1865_v52 = vsel %vm1862_vm8, %v1832_v37, %v3049_v38  ;;  %v1866_v23 = vsel %vm1862_vm8, %v1833_v20, %v3050_v55  ;;  %v2745_v9 = vunpack.i.h.bf16 %v3813_v59  ;;  %v2750_v1 = vunpack.i.h.bf16 %v4858_v56  ;;  %v3374_v59 = vld [vmem:[#allocation2 + $0x38] sm:$0xff]  ;;  %v3378_v55 = vld [vmem:[#allocation2 + $0xf0] sm:$0xff] }
 0x125   : > { %v3058_v61 = vpop.permute.xlu1 %3057  ;;  %v1881_v51 = vsel %vm1862_vm8, %v1848_v0, %v3054_v36  ;;  %v1882_v5 = vsel %vm1862_vm8, %v1849_v10, %v3055_v24  ;;  %v2749_v60 = vunpack.i.l.bf16 %v4858_v56  ;;  %v2785_v41 = vunpack.i.h.bf16 %v4859_v12 }
 0x126   : > { %v3060_v26 = vunpack.i.h.bf16 %v3058_v61  ;;  %v3059_v32 = vunpack.i.l.bf16 %v3058_v61  ;;  %v3063_v53 = vpop.permute.xlu0 %3062  ;;  %v2784_v30 = vunpack.i.l.bf16 %v4859_v12  ;;  %v2790_v48 = vunpack.i.h.bf16 %v4860_v31  ;;  %v3375_v61 = vld [vmem:[#allocation2 + $0x50] sm:$0xff] }
 0x127   : > { %v3065_v18 = vunpack.i.h.bf16 %v3063_v53  ;;  %v3064_v45 = vunpack.i.l.bf16 %v3063_v53  ;;  %3347 = vrot.lane.b32.xlu1 %v4855_v35, %s3396_s8  ;;  %v2789_v58 = vunpack.i.l.bf16 %v4860_v31  ;;  %v2825_v37 = vunpack.i.h.bf16 %v3882_v25  ;;  %v3377_v25 = vld [vmem:[#allocation2 + $0xf8] sm:$0xff] }
 0x128   : > { %3352 = vrot.lane.b32.xlu0 %v4188_v11, %s3397_s9  ;;  %v1896_v19 = vsel %vm1895_vm9, %v1863_v28, %v3059_v32  ;;  %v1897_v40 = vsel %vm1895_vm9, %v1864_v8, %v3060_v26  ;;  %v2830_v33 = vunpack.i.h.bf16 %v4861_v47  ;;  %v1670_v20 = vsel %vm199_vm0, %v3374_v59, %v2745_v9  ;;  %v3376_v8 = vld [vmem:[#allocation2 + $0x48] sm:$0xff]  ;;  %v4862_v26 = vld [vmem:[#allocation15_spill] sm:$0xff]  ;;  %v4863_v35 = vld [vmem:[#allocation16_spill] sm:$0xff] }
 0x129   : > { %v3068_v39 = vpop.permute.xlu1 %3067  ;;  %v1928_v27 = vpack.c.bf16 %v1897_v40, %v1896_v19  ;;  %v1912_v50 = vsel %vm1895_vm9, %v1879_v13, %v3064_v45  ;;  %v1913_v4 = vsel %vm1895_vm9, %v1880_v7, %v3065_v18  ;;  %v2829_v0 = vunpack.i.l.bf16 %v4861_v47  ;;  %v3379_v18 = vld [vmem:[#allocation2 + $0x110] sm:$0xff]  ;;  %v3380_v40 = vld [vmem:[#allocation2 + $0x108] sm:$0xff] }
 0x12a   : > { %v3070_v57 = vunpack.i.h.bf16 %v3068_v39  ;;  %v3069_v62 = vunpack.i.l.bf16 %v3068_v39  ;;  %v3073_v16 = vpop.permute.xlu0 %3072  ;;  %v1936_v11 = vpack.c.bf16 %v1913_v4, %v1912_v50  ;;  %v1672_v28 = vsel %vm199_vm0, %v3375_v61, %v2750_v1 }
 0x12b   : > { %v3075_v42 = vunpack.i.h.bf16 %v3073_v16  ;;  %v3074_v15 = vunpack.i.l.bf16 %v3073_v16  ;;  %3357 = vrot.lane.b32.xlu1 %v4190_v21, %s3397_s9  ;;  %2674 = vmatprep.mubr.msk.bf16.mxu0 %vm1964_vm10, %v1928_v27  ;;  %v1671_v38 = vsel %vm199_vm0, %v3376_v8, %v2749_v60  ;;  %v2865_v32 = vunpack.i.h.bf16 %v4862_v26 }
 0x12c   : > { %v1898_v49 = vsel %vm1895_vm9, %v1865_v52, %v3069_v62  ;;  %v1899_v29 = vsel %vm1895_vm9, %v1866_v23, %v3070_v57  ;;  %3362 = vrot.lane.b32.xlu0 %v4856_v63, %s3397_s9  ;;  %2690 = vmatprep.mubr.msk.bf16.mxu1 %vm1964_vm10, %v1936_v11  ;;  %v2864_v53 = vunpack.i.l.bf16 %v4862_v26  ;;  %v1686_v13 = vsel %vm199_vm0, %v3377_v25, %v2785_v41  ;;  %v4864_v52 = vld [vmem:[#allocation17_spill] sm:$0xff]  ;;  %v4865_v62 = vld [vmem:[#allocation18_spill] sm:$0xff] }
 0x12d   : > { %v1929_v34 = vpack.c.bf16 %v1899_v29, %v1898_v49  ;;  %v1914_v17 = vsel %vm1895_vm9, %v1881_v51, %v3074_v15  ;;  %v1915_v21 = vsel %vm1895_vm9, %v1882_v5, %v3075_v42  ;;  %v4392_v46 = vpop.permute.xlu1 %3077  ;;  %v1685_v36 = vsel %vm199_vm0, %v3378_v55, %v2784_v30  ;;  %v4866_v42 = vld [vmem:[#allocation27_spill] sm:$0xff]  ;;  %v4867_v29 = vld [vmem:[#allocation28_spill] sm:$0xff]  ;;  %v4868_v55 = vld [vmem:[#allocation37_spill] sm:$0xff] }
 0x12e   : > { %v1937_v44 = vpack.c.bf16 %v1915_v21, %v1914_v17  ;;  %v4394_v6 = vpop.permute.xlu0 %3082  ;;  %v1688_v45 = vsel %vm199_vm0, %v3379_v18, %v2790_v48  ;;  %v2870_v24 = vunpack.i.h.bf16 %v4863_v35  ;;  %v1687_v7 = vsel %vm199_vm0, %v3380_v40, %v2789_v58 }
 0x12f   : > { %3367 = vrot.lane.b32.xlu1 %v4857_v2, %s3397_s9  ;;  %2675 = vmatmul.mubr.msk.bf16.vlgmr.msra.gmra.mrb[0].mxu0 %vm1964_vm10, %v1929_v34  ;;  %v1703_v10 = vsel %vm1697_vm3, %v1670_v20, %v2825_v37  ;;  %v1705_v39 = vsel %vm1697_vm3, %v1672_v28, %v2830_v33  ;;  %v2869_v27 = vunpack.i.l.bf16 %v4863_v35  ;;  %v1704_v4 = vsel %vm1697_vm3, %v1671_v38, %v2829_v0 }
 0x130   : > { %2691 = vmatmul.mubr.msk.bf16.vlgmr.msra.gmra.mrb[0].mxu1 %vm1964_vm10, %v1937_v44  ;;  %v2905_v57 = vunpack.i.h.bf16 %v4864_v52  ;;  %v2910_v16 = vunpack.i.h.bf16 %v4865_v62  ;;  %v2909_v11 = vunpack.i.l.bf16 %v4865_v62  ;;  %v1718_v23 = vsel %vm1697_vm3, %v1685_v36, %v2864_v53 }
 0x131   : > { %v4402_v54 = vpop.permute.xlu1 %3087  ;;  %v1719_v51 = vsel %vm1697_vm3, %v1686_v13, %v2865_v32  ;;  %v2945_v15 = vunpack.i.h.bf16 %v4866_v42  ;;  %v2944_v5 = vunpack.i.l.bf16 %v4866_v42  ;;  %v1721_v49 = vsel %vm1697_vm3, %v1688_v45, %v2870_v24 }
 0x132   : > { %v4404_v22 = vpop.permute.xlu0 %3092  ;;  %v2950_v63 = vunpack.i.h.bf16 %v4867_v29  ;;  %v2949_v34 = vunpack.i.l.bf16 %v4867_v29  ;;  %v2995_v17 = vunpack.i.h.bf16 %v4176_v14  ;;  %v1720_v44 = vsel %vm1697_vm3, %v1687_v7, %v2869_v27 }
 0x133   : > { %v3080_v2 = vunpack.i.h.bf16 %v4392_v46  ;;  %v3079_v9 = vunpack.i.l.bf16 %v4392_v46  ;;  %v3085_v56 = vunpack.i.h.bf16 %v4394_v6  ;;  %v1736_v60 = vsel %vm1730_vm4, %v1703_v10, %v2905_v57 }
 0x134   : > { %v1737_v12 = vsel %vm1730_vm4, %v1704_v4, %v2909_v11  ;;  %v1738_v41 = vsel %vm1730_vm4, %v1705_v39, %v2910_v16  ;;  %v3084_v30 = vunpack.i.l.bf16 %v4394_v6  ;;  %v1751_v14 = vsel %vm1730_vm4, %v1718_v23, %v2944_v5 }
 0x135   : > { %v4412_v3 = vpop.permute.xlu1 %3097  ;;  %v1752_v31 = vsel %vm1730_vm4, %v1719_v51, %v2945_v15  ;;  %v3090_v48 = vunpack.i.h.bf16 %v4402_v54  ;;  %v3089_v58 = vunpack.i.l.bf16 %v4402_v54  ;;  %v1753_v46 = vsel %vm1730_vm4, %v1720_v44, %v2949_v34 }
 0x136   : > { %v4417_v43 = vpop.permute.xlu0 %3102  ;;  %v1754_v37 = vsel %vm1730_vm4, %v1721_v49, %v2950_v63  ;;  %v1769_v47 = vsel %vm1763_vm5, %v1736_v60, %v2995_v17  ;;  %v3094_v33 = vunpack.i.l.bf16 %v4404_v22  ;;  %v1784_v6 = vsel %vm1763_vm5, %v1751_v14, %v3079_v9 }
 0x137   : > { %v1785_v20 = vsel %vm1763_vm5, %v1752_v31, %v3080_v2  ;;  %v1771_v0 = vsel %vm1763_vm5, %v1738_v41, %v3085_v56  ;;  %v3095_v61 = vunpack.i.h.bf16 %v4404_v22  ;;  %v1770_v54 = vsel %vm1763_vm5, %v1737_v12, %v3084_v30 }
 0x138   : > { %v3100_v8 = vunpack.i.h.bf16 %v4412_v3  ;;  %v3099_v38 = vunpack.i.l.bf16 %v4412_v3  ;;  %v3104_v26 = vunpack.i.l.bf16 %v4417_v43  ;;  %v1786_v32 = vsel %vm1763_vm5, %v1753_v46, %v3089_v58 }
 0x139   : > { %v4429_v19 = vpop.permute.xlu1 %3107  ;;  %v1787_v53 = vsel %vm1763_vm5, %v1754_v37, %v3090_v48  ;;  %v3105_v25 = vunpack.i.h.bf16 %v4417_v43  ;;  %v1801_v22 = vsel %vm1796_vm6, %v4868_v55, %v3094_v33  ;;  %v1802_v35 = vsel %vm1796_vm6, %v1769_v47, %v3095_v61 }
 0x13a   : > { %v4435_v50 = vpop.permute.xlu0 %3112  ;;  %v3109_v13 = vunpack.i.l.bf16 %v4429_v19  ;;  %v3110_v36 = vunpack.i.h.bf16 %v4429_v19  ;;  %v1817_v43 = vsel %vm1796_vm6, %v1784_v6, %v3099_v38  ;;  %v1818_v39 = vsel %vm1796_vm6, %v1785_v20, %v3100_v8 }
 0x13b   : > { %v3115_v18 = vunpack.i.h.bf16 %v4435_v50  ;;  %v3114_v45 = vunpack.i.l.bf16 %v4435_v50  ;;  %v1803_v27 = vsel %vm1796_vm6, %v1770_v54, %v3104_v26  ;;  %v1804_v19 = vsel %vm1796_vm6, %v1771_v0, %v3105_v25 }
 0x13c   : > { %v1819_v52 = vsel %vm1796_vm6, %v1786_v32, %v3109_v13  ;;  %v1820_v62 = vsel %vm1796_vm6, %v1787_v53, %v3110_v36 }
 0x13d   : > { %v3118_v21 = vpop.permute.xlu1 %3117  ;;  %v1834_v16 = vsel %vm1829_vm7, %v1801_v22, %v3114_v45  ;;  %v1835_v11 = vsel %vm1829_vm7, %v1802_v35, %v3115_v18 }
 0x13e   : > { %v3123_v1 = vpop.permute.xlu0 %3122  ;;  %v3120_v24 = vunpack.i.h.bf16 %v3118_v21  ;;  %v3119_v40 = vunpack.i.l.bf16 %v3118_v21 }
 0x13f   : > { %v3124_v7 = vunpack.i.l.bf16 %v3123_v1  ;;  %v3125_v4 = vunpack.i.h.bf16 %v3123_v1 }
 0x140   : > { %v1850_v42 = vsel %vm1829_vm7, %v1817_v43, %v3119_v40  ;;  %v1851_v15 = vsel %vm1829_vm7, %v1818_v39, %v3120_v24 }
 0x141   : > { %v4465_v59 = vpop.permute.xlu1 %3127  ;;  %v1836_v5 = vsel %vm1829_vm7, %v1803_v27, %v3124_v7  ;;  %v1837_v63 = vsel %vm1829_vm7, %v1804_v19, %v3125_v4 }
 0x142   : > { %v3133_v28 = vpop.permute.xlu0 %3132  ;;  %v3130_v34 = vunpack.i.h.bf16 %v4465_v59  ;;  %v3129_v1 = vunpack.i.l.bf16 %v4465_v59 }
 0x143   : > { %v3135_v57 = vunpack.i.h.bf16 %v3133_v28  ;;  %v3134_v50 = vunpack.i.l.bf16 %v3133_v28 }
 0x144   : > { %v1852_v28 = vsel %vm1829_vm7, %v1819_v52, %v3129_v1  ;;  %v1853_v32 = vsel %vm1829_vm7, %v1820_v62, %v3130_v34  ;;  %v4871_v34 = vld [vmem:[#allocation29_spill] sm:$0xff] }
 0x145   : > { %v3138_v3 = vpop.permute.xlu1 %3137  ;;  %v1867_v44 = vsel %vm1862_vm8, %v1834_v16, %v3134_v50  ;;  %v1868_v2 = vsel %vm1862_vm8, %v1835_v11, %v3135_v57 }
 0x146   : > { %v3143_v10 = vpop.permute.xlu0 %3142  ;;  %v3139_v23 = vunpack.i.l.bf16 %v3138_v3  ;;  %v3140_v49 = vunpack.i.h.bf16 %v3138_v3 }
 0x147   : > { %v3145_v9 = vunpack.i.h.bf16 %v3143_v10  ;;  %v3144_v56 = vunpack.i.l.bf16 %v3143_v10 }
 0x148   : > { %v1883_v60 = vsel %vm1862_vm8, %v1850_v42, %v3139_v23  ;;  %v1884_v14 = vsel %vm1862_vm8, %v1851_v15, %v3140_v49  ;;  %v4869_v42 = vld [vmem:[#allocation19_spill] sm:$0xff] }
 0x149   : > { %v3148_v51 = vpop.permute.xlu1 %3147  ;;  %v1869_v20 = vsel %vm1862_vm8, %v1836_v5, %v3144_v56  ;;  %v1870_v59 = vsel %vm1862_vm8, %v1837_v63, %v3145_v9  ;;  %v4870_v5 = vld [vmem:[#allocation20_spill] sm:$0xff] }
 0x14a   : > { %v3153_v29 = vpop.permute.xlu0 %3152  ;;  %v3150_v37 = vunpack.i.h.bf16 %v3148_v51  ;;  %v3149_v47 = vunpack.i.l.bf16 %v3148_v51 }
 0x14b   : > { %v3155_v17 = vunpack.i.h.bf16 %v3153_v29  ;;  %v3154_v21 = vunpack.i.l.bf16 %v3153_v29 }
 0x14c   : > { %v1885_v22 = vsel %vm1862_vm8, %v1852_v28, %v3149_v47  ;;  %v1886_v36 = vsel %vm1862_vm8, %v1853_v32, %v3150_v37 }
 0x14d   : > { %v1900_v12 = vsel %vm1895_vm9, %v1867_v44, %v3154_v21  ;;  %v1901_v41 = vsel %vm1895_vm9, %v1868_v2, %v3155_v17  ;;  %v3158_v30 = vpop.permute.xlu1 %3157  ;;  %v4872_v21 = vld [vmem:[#allocation30_spill] sm:$0xff] }
 0x14e   : > { %v1930_v31 = vpack.c.bf16 %v1901_v41, %v1900_v12  ;;  %v3160_v48 = vunpack.i.h.bf16 %v3158_v30  ;;  %v3159_v58 = vunpack.i.l.bf16 %v3158_v30  ;;  %v3163_v46 = vpop.permute.xlu0 %3162  ;;  %v4873_v2 = vld [vmem:[#allocation22_spill] sm:$0xff] }
 0x14f   : > { %v3165_v33 = vunpack.i.h.bf16 %v3163_v46  ;;  %v3164_v6 = vunpack.i.l.bf16 %v3163_v46 }
 0x150   : > { %v1916_v0 = vsel %vm1895_vm9, %v1883_v60, %v3159_v58  ;;  %v1917_v61 = vsel %vm1895_vm9, %v1884_v14, %v3160_v48  ;;  %2678 = vmatprep.mubr.msk.bf16.mxu0 %vm1964_vm10, %v1930_v31  ;;  %v4874_v60 = vld [vmem:[#allocation21_spill] sm:$0xff]  ;;  %v4875_v31 = vld [vmem:[#allocation31_spill] sm:$0xff]  ;;  %v4876_v58 = vld [vmem:[#allocation32_spill] sm:$0xff] }
 0x151   : > { %v1938_v54 = vpack.c.bf16 %v1917_v61, %v1916_v0  ;;  %v1902_v8 = vsel %vm1895_vm9, %v1869_v20, %v3164_v6  ;;  %v1903_v38 = vsel %vm1895_vm9, %v1870_v59, %v3165_v33  ;;  %v3168_v26 = vpop.permute.xlu1 %3167 }
 0x152   : > { %v1931_v53 = vpack.c.bf16 %v1903_v38, %v1902_v8  ;;  %v3170_v25 = vunpack.i.h.bf16 %v3168_v26  ;;  %v3169_v13 = vunpack.i.l.bf16 %v3168_v26  ;;  %v3173_v55 = vpop.permute.xlu0 %3172 }
 0x153   : > { %2694 = vmatprep.mubr.msk.bf16.mxu1 %vm1964_vm10, %v1938_v54  ;;  %v3175_v4 = vunpack.i.h.bf16 %v3173_v55  ;;  %v3174_v19 = vunpack.i.l.bf16 %v3173_v55 }
 0x154   : > { %v1918_v18 = vsel %vm1895_vm9, %v1885_v22, %v3169_v13  ;;  %v1919_v45 = vsel %vm1895_vm9, %v1886_v36, %v3170_v25  ;;  %2679 = vmatmul.mubr.msk.bf16.gmra.mrb[4].mxu0 %vm1964_vm10, %v1931_v53 }
 0x155   : > { %v1939_v3 = vpack.c.bf16 %v1919_v45, %v1918_v18  ;;  %v3178_v35 = vpop.permute.xlu1 %3177  ;;  %v1772_v15 = vsel %vm1763_vm5, %v4869_v42, %v3174_v19  ;;  %v1773_v49 = vsel %vm1763_vm5, %v4870_v5, %v3175_v4 }
 0x156   : > { %v3183_v24 = vpop.permute.xlu0 %3182  ;;  %v3180_v57 = vunpack.i.h.bf16 %v3178_v35  ;;  %v3179_v50 = vunpack.i.l.bf16 %v3178_v35 }
 0x157   : > { %2695 = vmatmul.mubr.msk.bf16.gmra.mrb[4].mxu1 %vm1964_vm10, %v1939_v3  ;;  %v3185_v62 = vunpack.i.h.bf16 %v3183_v24  ;;  %v3184_v11 = vunpack.i.l.bf16 %v3183_v24 }
 0x158   : > { %v1788_v17 = vsel %vm1763_vm5, %v4871_v34, %v3179_v50  ;;  %v1789_v44 = vsel %vm1763_vm5, %v4872_v21, %v3180_v57 }
 0x159   : > { %v3188_v40 = vpop.permute.xlu1 %3187  ;;  %v1775_v9 = vsel %vm1763_vm5, %v4873_v2, %v3185_v62  ;;  %v1774_v12 = vsel %vm1763_vm5, %v4874_v60, %v3184_v11 }
 0x15a   : > { %v3193_v7 = vpop.permute.xlu0 %3192  ;;  %v3190_v23 = vunpack.i.h.bf16 %v3188_v40  ;;  %v3189_v51 = vunpack.i.l.bf16 %v3188_v40 }
 0x15b   : > { %v3194_v29 = vunpack.i.l.bf16 %v3193_v7  ;;  %v3195_v56 = vunpack.i.h.bf16 %v3193_v7 }
 0x15c   : > { %v1790_v48 = vsel %vm1763_vm5, %v4875_v31, %v3189_v51  ;;  %v1791_v46 = vsel %vm1763_vm5, %v4876_v58, %v3190_v23 }
 0x15d   : > { %v3198_v10 = vpop.permute.xlu1 %3197  ;;  %v1805_v33 = vsel %vm1796_vm6, %v1772_v15, %v3194_v29  ;;  %v1806_v61 = vsel %vm1796_vm6, %v1773_v49, %v3195_v56 }
 0x15e   : > { %v3203_v43 = vpop.permute.xlu0 %3202  ;;  %v3200_v41 = vunpack.i.h.bf16 %v3198_v10  ;;  %v3199_v30 = vunpack.i.l.bf16 %v3198_v10 }
 0x15f   : > { %v3204_v14 = vunpack.i.l.bf16 %v3203_v43  ;;  %v3205_v37 = vunpack.i.h.bf16 %v3203_v43 }
 0x160   : > { %v1821_v26 = vsel %vm1796_vm6, %v1788_v17, %v3199_v30  ;;  %v1822_v32 = vsel %vm1796_vm6, %v1789_v44, %v3200_v41 }
 0x161   : > { %v3208_v39 = vpop.permute.xlu1 %3207  ;;  %v1807_v53 = vsel %vm1796_vm6, %v1774_v12, %v3204_v14  ;;  %v1808_v13 = vsel %vm1796_vm6, %v1775_v9, %v3205_v37 }
 0x162   : > { %v3213_v27 = vpop.permute.xlu0 %3212  ;;  %v3209_v47 = vunpack.i.l.bf16 %v3208_v39  ;;  %v3210_v6 = vunpack.i.h.bf16 %v3208_v39 }
 0x163   : > { %v3215_v20 = vunpack.i.h.bf16 %v3213_v27  ;;  %v3214_v59 = vunpack.i.l.bf16 %v3213_v27 }
 0x164   : > { %v1823_v55 = vsel %vm1796_vm6, %v1790_v48, %v3209_v47  ;;  %v1824_v18 = vsel %vm1796_vm6, %v1791_v46, %v3210_v6 }
 0x165   : > { %v3218_v52 = vpop.permute.xlu1 %3217  ;;  %v1838_v45 = vsel %vm1829_vm7, %v1805_v33, %v3214_v59  ;;  %v1839_v3 = vsel %vm1829_vm7, %v1806_v61, %v3215_v20 }
 0x166   : > { %v3223_v16 = vpop.permute.xlu0 %3222  ;;  %v3220_v28 = vunpack.i.h.bf16 %v3218_v52  ;;  %v3219_v54 = vunpack.i.l.bf16 %v3218_v52 }
 0x167   : > { %v3224_v8 = vunpack.i.l.bf16 %v3223_v16  ;;  %v3225_v25 = vunpack.i.h.bf16 %v3223_v16 }
 0x168   : > { %v1854_v40 = vsel %vm1829_vm7, %v1821_v26, %v3219_v54  ;;  %v1855_v7 = vsel %vm1829_vm7, %v1822_v32, %v3220_v28 }
 0x169   : > { %v4525_v63 = vpop.permute.xlu1 %3227  ;;  %v1840_v10 = vsel %vm1829_vm7, %v1807_v53, %v3224_v8  ;;  %v1841_v27 = vsel %vm1829_vm7, %v1808_v13, %v3225_v25 }
 0x16a   : > { %v3233_v1 = vpop.permute.xlu0 %3232  ;;  %v3230_v4 = vunpack.i.h.bf16 %v4525_v63  ;;  %v3229_v11 = vunpack.i.l.bf16 %v4525_v63 }
 0x16b   : > { %v3235_v22 = vunpack.i.h.bf16 %v3233_v1  ;;  %v3234_v36 = vunpack.i.l.bf16 %v3233_v1 }
 0x16c   : > { %v1856_v12 = vsel %vm1829_vm7, %v1823_v55, %v3229_v11  ;;  %v1857_v48 = vsel %vm1829_vm7, %v1824_v18, %v3230_v4  ;;  %v4879_v4 = vld [vmem:[#allocation33_spill] sm:$0xff] }
 0x16d   : > { %v3238_v0 = vpop.permute.xlu1 %3237  ;;  %v1871_v57 = vsel %vm1862_vm8, %v1838_v45, %v3234_v36  ;;  %v1872_v50 = vsel %vm1862_vm8, %v1839_v3, %v3235_v22 }
 0x16e   : > { %v3243_v38 = vpop.permute.xlu0 %3242  ;;  %v3239_v35 = vunpack.i.l.bf16 %v3238_v0  ;;  %v3240_v43 = vunpack.i.h.bf16 %v3238_v0 }
 0x16f   : > { %v3245_v62 = vunpack.i.h.bf16 %v3243_v38  ;;  %v3244_v16 = vunpack.i.l.bf16 %v3243_v38 }
 0x170   : > { %v1887_v23 = vsel %vm1862_vm8, %v1854_v40, %v3239_v35  ;;  %v1888_v5 = vsel %vm1862_vm8, %v1855_v7, %v3240_v43  ;;  %v4877_v40 = vld [vmem:[#allocation23_spill] sm:$0xff] }
 0x171   : > { %v3248_v24 = vpop.permute.xlu1 %3247  ;;  %v1873_v56 = vsel %vm1862_vm8, %v1840_v10, %v3244_v16  ;;  %v1874_v63 = vsel %vm1862_vm8, %v1841_v27, %v3245_v62  ;;  %v4878_v10 = vld [vmem:[#allocation24_spill] sm:$0xff] }
 0x172   : > { %v3253_v39 = vpop.permute.xlu0 %3252  ;;  %v3250_v21 = vunpack.i.h.bf16 %v3248_v24  ;;  %v3249_v44 = vunpack.i.l.bf16 %v3248_v24 }
 0x173   : > { %v3255_v19 = vunpack.i.h.bf16 %v3253_v39  ;;  %v3254_v52 = vunpack.i.l.bf16 %v3253_v39 }
 0x174   : > { %v1889_v33 = vsel %vm1862_vm8, %v1856_v12, %v3249_v44  ;;  %v1890_v6 = vsel %vm1862_vm8, %v1857_v48, %v3250_v21 }
 0x175   : > { %v1904_v51 = vsel %vm1895_vm9, %v1871_v57, %v3254_v52  ;;  %v1905_v42 = vsel %vm1895_vm9, %v1872_v50, %v3255_v19  ;;  %v3258_v15 = vpop.permute.xlu1 %3257  ;;  %v4880_v52 = vld [vmem:[#allocation34_spill] sm:$0xff] }
 0x176   : > { %v1932_v49 = vpack.c.bf16 %v1905_v42, %v1904_v51  ;;  %v3260_v29 = vunpack.i.h.bf16 %v3258_v15  ;;  %v3259_v34 = vunpack.i.l.bf16 %v3258_v15  ;;  %v3263_v17 = vpop.permute.xlu0 %3262  ;;  %v4881_v50 = vld [vmem:[#allocation26_spill] sm:$0xff] }
 0x177   : > { %v3265_v2 = vunpack.i.h.bf16 %v3263_v17  ;;  %v3264_v9 = vunpack.i.l.bf16 %v3263_v17 }
 0x178   : > { %v1920_v1 = vsel %vm1895_vm9, %v1887_v23, %v3259_v34  ;;  %v1921_v60 = vsel %vm1895_vm9, %v1888_v5, %v3260_v29  ;;  %2682 = vmatprep.mubr.msk.bf16.mxu0 %vm1964_vm10, %v1932_v49  ;;  %v4882_v23 = vld [vmem:[#allocation25_spill] sm:$0xff]  ;;  %v4883_v49 = vld [vmem:[#allocation35_spill] sm:$0xff]  ;;  %v4884_v34 = vld [vmem:[#allocation36_spill] sm:$0xff] }
 0x179   : > { %v1940_v41 = vpack.c.bf16 %v1921_v60, %v1920_v1  ;;  %v1906_v30 = vsel %vm1895_vm9, %v1873_v56, %v3264_v9  ;;  %v1907_v14 = vsel %vm1895_vm9, %v1874_v63, %v3265_v2  ;;  %v3268_v31 = vpop.permute.xlu1 %3267 }
 0x17a   : > { %v1933_v58 = vpack.c.bf16 %v1907_v14, %v1906_v30  ;;  %v3270_v46 = vunpack.i.h.bf16 %v3268_v31  ;;  %v3269_v37 = vunpack.i.l.bf16 %v3268_v31  ;;  %v3273_v47 = vpop.permute.xlu0 %3272 }
 0x17b   : > { %2698 = vmatprep.mubr.msk.bf16.mxu1 %vm1964_vm10, %v1940_v41  ;;  %v3275_v25 = vunpack.i.h.bf16 %v3273_v47  ;;  %v3274_v13 = vunpack.i.l.bf16 %v3273_v47 }
 0x17c   : > { %v1922_v20 = vsel %vm1895_vm9, %v1889_v33, %v3269_v37  ;;  %v1923_v59 = vsel %vm1895_vm9, %v1890_v6, %v3270_v46  ;;  %2683 = vmatmul.mubr.msk.bf16.gmra.mrb[8].mxu0 %vm1964_vm10, %v1933_v58 }
 0x17d   : > { %v1941_v0 = vpack.c.bf16 %v1923_v59, %v1922_v20  ;;  %v3278_v61 = vpop.permute.xlu1 %3277  ;;  %v1776_v7 = vsel %vm1763_vm5, %v4877_v40, %v3274_v13  ;;  %v1777_v43 = vsel %vm1763_vm5, %v4878_v10, %v3275_v25 }
 0x17e   : > { %v3283_v28 = vpop.permute.xlu0 %3282  ;;  %v3280_v22 = vunpack.i.h.bf16 %v3278_v61  ;;  %v3279_v36 = vunpack.i.l.bf16 %v3278_v61 }
 0x17f   : > { %2699 = vmatmul.mubr.msk.bf16.gmra.mrb[8].mxu1 %vm1964_vm10, %v1941_v0  ;;  %v3285_v18 = vunpack.i.h.bf16 %v3283_v28  ;;  %v3284_v3 = vunpack.i.l.bf16 %v3283_v28 }
 0x180   : > { %v1792_v19 = vsel %vm1763_vm5, %v4879_v4, %v3279_v36  ;;  %v1793_v57 = vsel %vm1763_vm5, %v4880_v52, %v3280_v22 }
 0x181   : > { %v3288_v54 = vpop.permute.xlu1 %3287  ;;  %v1779_v62 = vsel %vm1763_vm5, %v4881_v50, %v3285_v18  ;;  %v1778_v51 = vsel %vm1763_vm5, %v4882_v23, %v3284_v3 }
 0x182   : > { %v3293_v8 = vpop.permute.xlu0 %3292  ;;  %v3290_v35 = vunpack.i.h.bf16 %v3288_v54  ;;  %v3289_v24 = vunpack.i.l.bf16 %v3288_v54 }
 0x183   : > { %v3294_v39 = vunpack.i.l.bf16 %v3293_v8  ;;  %v3295_v16 = vunpack.i.h.bf16 %v3293_v8 }
 0x184   : > { %v1794_v29 = vsel %vm1763_vm5, %v4883_v49, %v3289_v24  ;;  %v1795_v17 = vsel %vm1763_vm5, %v4884_v34, %v3290_v35 }
 0x185   : > { %v3298_v38 = vpop.permute.xlu1 %3297  ;;  %v1809_v2 = vsel %vm1796_vm6, %v1776_v7, %v3294_v39  ;;  %v1810_v60 = vsel %vm1796_vm6, %v1777_v43, %v3295_v16 }
 0x186   : > { %v3303_v26 = vpop.permute.xlu0 %3302  ;;  %v3300_v42 = vunpack.i.h.bf16 %v3298_v38  ;;  %v3299_v15 = vunpack.i.l.bf16 %v3298_v38 }
 0x187   : > { %v3304_v5 = vunpack.i.l.bf16 %v3303_v26  ;;  %v3305_v21 = vunpack.i.h.bf16 %v3303_v26 }
 0x188   : > { %v1825_v31 = vsel %vm1796_vm6, %v1792_v19, %v3299_v15  ;;  %v1826_v48 = vsel %vm1796_vm6, %v1793_v57, %v3300_v42 }
 0x189   : > { %v3308_v32 = vpop.permute.xlu1 %3307  ;;  %v1811_v58 = vsel %vm1796_vm6, %v1778_v51, %v3304_v5  ;;  %v1812_v37 = vsel %vm1796_vm6, %v1779_v62, %v3305_v21 }
 0x18a   : > { %v3313_v53 = vpop.permute.xlu0 %3312  ;;  %v3309_v44 = vunpack.i.l.bf16 %v3308_v32  ;;  %v3310_v9 = vunpack.i.h.bf16 %v3308_v32 }
 0x18b   : > { %v3315_v56 = vunpack.i.h.bf16 %v3313_v53  ;;  %v3314_v63 = vunpack.i.l.bf16 %v3313_v53 }
 0x18c   : > { %v1827_v47 = vsel %vm1796_vm6, %v1794_v29, %v3309_v44  ;;  %v1828_v20 = vsel %vm1796_vm6, %v1795_v17, %v3310_v9 }
 0x18d   : > { %v3318_v55 = vpop.permute.xlu1 %3317  ;;  %v1842_v59 = vsel %vm1829_vm7, %v1809_v2, %v3314_v63  ;;  %v1843_v0 = vsel %vm1829_vm7, %v1810_v60, %v3315_v56 }
 0x18e   : > { %v3323_v45 = vpop.permute.xlu0 %3322  ;;  %v3320_v12 = vunpack.i.h.bf16 %v3318_v55  ;;  %v3319_v41 = vunpack.i.l.bf16 %v3318_v55 }
 0x18f   : > { %v3324_v30 = vunpack.i.l.bf16 %v3323_v45  ;;  %v3325_v46 = vunpack.i.h.bf16 %v3323_v45 }
 0x190   : > { %v1858_v54 = vsel %vm1829_vm7, %v1825_v31, %v3319_v41  ;;  %v1859_v8 = vsel %vm1829_vm7, %v1826_v48, %v3320_v12  ;;  %v4641_v12 = vld [vmem:[%s4784_s3] ss:$0 sm:$0xff] }
 0x191   : > { %v4581_v27 = vpop.permute.xlu1 %3327  ;;  %v1844_v38 = vsel %vm1829_vm7, %v1811_v58, %v3324_v30  ;;  %v1845_v53 = vsel %vm1829_vm7, %v1812_v37, %v3325_v46 }
 0x192   : > { %v3333_v11 = vpop.permute.xlu0 %3332  ;;  %v3330_v25 = vunpack.i.h.bf16 %v4581_v27  ;;  %v3329_v3 = vunpack.i.l.bf16 %v4581_v27 }
 0x193   : > { %v3335_v33 = vunpack.i.h.bf16 %v3333_v11  ;;  %v3334_v6 = vunpack.i.l.bf16 %v3333_v11 }
 0x194   : > { %v1860_v51 = vsel %vm1829_vm7, %v1827_v47, %v3329_v3  ;;  %v1861_v29 = vsel %vm1829_vm7, %v1828_v20, %v3330_v25 }
 0x195   : > { %v3338_v1 = vpop.permute.xlu1 %3337  ;;  %v1875_v22 = vsel %vm1862_vm8, %v1842_v59, %v3334_v6  ;;  %v1876_v36 = vsel %vm1862_vm8, %v1843_v0, %v3335_v33 }
 0x196   : > { %v3343_v14 = vpop.permute.xlu0 %3342  ;;  %v3339_v61 = vunpack.i.l.bf16 %v3338_v1  ;;  %v3340_v26 = vunpack.i.h.bf16 %v3338_v1  ;;  %v4636_v1 = vld [vmem:[%s4783_s2] ss:$0 sm:$0xff] }
 0x197   : > { %v3345_v18 = vunpack.i.h.bf16 %v3343_v14  ;;  %v3344_v45 = vunpack.i.l.bf16 %v3343_v14 }
 0x198   : > { %v1891_v35 = vsel %vm1862_vm8, %v1858_v54, %v3339_v61  ;;  %v1892_v10 = vsel %vm1862_vm8, %v1859_v8, %v3340_v26 }
 0x199   : > { %v3348_v28 = vpop.permute.xlu1 %3347  ;;  %v1877_v16 = vsel %vm1862_vm8, %v1844_v38, %v3344_v45  ;;  %v1878_v27 = vsel %vm1862_vm8, %v1845_v53, %v3345_v18 }
 0x19a   : > { %v3353_v32 = vpop.permute.xlu0 %3352  ;;  %v3350_v52 = vunpack.i.h.bf16 %v3348_v28  ;;  %v3349_v57 = vunpack.i.l.bf16 %v3348_v28 }
 0x19b   : > { %v3355_v13 = vunpack.i.h.bf16 %v3353_v32  ;;  %v3354_v55 = vunpack.i.l.bf16 %v3353_v32 }
 0x19c   : > { %v1893_v44 = vsel %vm1862_vm8, %v1860_v51, %v3349_v57  ;;  %v1894_v2 = vsel %vm1862_vm8, %v1861_v29, %v3350_v52 }
 0x19d   : > { %v1908_v24 = vsel %vm1895_vm9, %v1875_v22, %v3354_v55  ;;  %v1909_v40 = vsel %vm1895_vm9, %v1876_v36, %v3355_v13  ;;  %v3358_v7 = vpop.permute.xlu1 %3357 }
 0x19e   : > { %v1934_v43 = vpack.c.bf16 %v1909_v40, %v1908_v24  ;;  %v3360_v39 = vunpack.i.h.bf16 %v3358_v7  ;;  %v3359_v4 = vunpack.i.l.bf16 %v3358_v7  ;;  %v3363_v19 = vpop.permute.xlu0 %3362 }
 0x19f   : > { %v3365_v50 = vunpack.i.h.bf16 %v3363_v19  ;;  %v3364_v62 = vunpack.i.l.bf16 %v3363_v19 }
 0x1a0   : > { %v1924_v11 = vsel %vm1895_vm9, %v1891_v35, %v3359_v4  ;;  %v1925_v23 = vsel %vm1895_vm9, %v1892_v10, %v3360_v39  ;;  %2686 = vmatprep.mubr.msk.bf16.mxu0 %vm1964_vm10, %v1934_v43 }
 0x1a1   : > { %v1942_v42 = vpack.c.bf16 %v1925_v23, %v1924_v11  ;;  %v1910_v15 = vsel %vm1895_vm9, %v1877_v16, %v3364_v62  ;;  %v1911_v5 = vsel %vm1895_vm9, %v1878_v27, %v3365_v50  ;;  %v3368_v49 = vpop.permute.xlu1 %3367 }
 0x1a2   : > { %v1935_v34 = vpack.c.bf16 %v1911_v5, %v1910_v15  ;;  %v3370_v17 = vunpack.i.h.bf16 %v3368_v49  ;;  %v3369_v21 = vunpack.i.l.bf16 %v3368_v49 }
 0x1a3   : > { %2702 = vmatprep.mubr.msk.bf16.mxu1 %vm1964_vm10, %v1942_v42 }
 0x1a4   : > { %v1926_v9 = vsel %vm1895_vm9, %v1893_v44, %v3369_v21  ;;  %v1927_v56 = vsel %vm1895_vm9, %v1894_v2, %v3370_v17  ;;  %2687 = vmatmul.mubr.msk.bf16.gmra.mrb[12].mxu0 %vm1964_vm10, %v1935_v34 }
 0x1a5   : > { %v1943_v63 = vpack.c.bf16 %v1927_v56, %v1926_v9 }
 0x1a7   : > { %2703 = vmatmul.mubr.msk.bf16.gmra.mrb[12].mxu1 %vm1964_vm10, %v1943_v63 }
 0x202   : > { %v2676_v60 = vpop.f32.mrb[0].mxu0 }
 0x203   : > { %v2187_v41 = vmul.f32 %v2676_v60, %v4636_v1  ;;  %v2692_v30 = vpop.f32.mrb[0].mxu1  ;;  %v2051_v14 = vpop.f32.mrb[1].mxu0 }
 0x204   : > { %v2203_v31 = vmul.f32 %v2692_v30, %v4636_v1  ;;  %v2185_v48 = vmul.f32 %v4636_v1, %v2051_v14  ;;  %v2115_v58 = vpop.f32.mrb[1].mxu1  ;;  %v2677_v46 = vpop.f32.mrb[2].mxu0 }
 0x205   : > { %v2226_v37 = vadd.f32 %v4641_v12, %v2187_v41  ;;  %v2201_v47 = vmul.f32 %v4636_v1, %v2115_v58  ;;  %v2188_v33 = vmul.f32 %v2677_v46, %v4636_v1  ;;  %v2693_v6 = vpop.f32.mrb[2].mxu1  ;;  %v2054_v20 = vpop.f32.mrb[3].mxu0 }
 0x206   : > { %v2242_v59 = vadd.f32 %v4641_v12, %v2203_v31  ;;  %v2224_v0 = vadd.f32 %v4641_v12, %v2185_v48  ;;  %v2204_v61 = vmul.f32 %v2693_v6, %v4636_v1  ;;  %v2186_v28 = vmul.f32 %v4636_v1, %v2054_v20  ;;  %v2118_v54 = vpop.f32.mrb[3].mxu1 }
 0x207   : > { %v2540_v8 = vpack.c.bf16 %v2226_v37, %v2226_v37  ;;  %v2240_v38 = vadd.f32 %v4641_v12, %v2201_v47  ;;  %v2227_v26 = vadd.f32 %v4641_v12, %v2188_v33  ;;  %v2202_v32 = vmul.f32 %v4636_v1, %v2118_v54 }
 0x208   : > { %v2556_v53 = vpack.c.bf16 %v2242_v59, %v2242_v59  ;;  %v2538_v25 = vpack.c.bf16 %v2224_v0, %v2224_v0  ;;  %v2243_v13 = vadd.f32 %v4641_v12, %v2204_v61  ;;  %v2225_v55 = vadd.f32 %v4641_v12, %v2186_v28 }
 0x209   : > { %2387 = vst.msk [vmem:[%s4654_s19 + $0x8] sm:$0xf] %vm2384_vm11, %v2540_v8  ;;  %v2554_v22 = vpack.c.bf16 %v2240_v38, %v2240_v38  ;;  %v2541_v36 = vpack.c.bf16 %v2227_v26, %v2227_v26  ;;  %v2241_v18 = vadd.f32 %v4641_v12, %v2202_v32 }
 0x20a   : > { %2403 = vst.msk [vmem:[%s4654_s19 + $0x48] sm:$0xf] %vm2384_vm11, %v2556_v53  ;;  %2385 = vst.msk [vmem:[%s4654_s19] sm:$0xf] %vm2384_vm11, %v2538_v25  ;;  %v2557_v45 = vpack.c.bf16 %v2243_v13, %v2243_v13  ;;  %v2539_v3 = vpack.c.bf16 %v2225_v55, %v2225_v55 }
 0x20b   : > { %2401 = vst.msk [vmem:[%s4654_s19 + $0x40] sm:$0xf] %vm2384_vm11, %v2554_v22  ;;  %2388 = vst.msk [vmem:[%s4654_s19 + $0xc] sm:$0xf] %vm2384_vm11, %v2541_v36  ;;  %v2555_v35 = vpack.c.bf16 %v2241_v18, %v2241_v18 }
 0x20c   : > { %2404 = vst.msk [vmem:[%s4654_s19 + $0x4c] sm:$0xf] %vm2384_vm11, %v2557_v45  ;;  %2386 = vst.msk [vmem:[%s4654_s19 + $0x4] sm:$0xf] %vm2384_vm11, %v2539_v3 }
 0x20d   : > { %2402 = vst.msk [vmem:[%s4654_s19 + $0x44] sm:$0xf] %vm2384_vm11, %v2555_v35 }
 0x227   : > { %v2680_v24 = vpop.f32.mrb[4].mxu0 }
 0x228   : > { %v2191_v40 = vmul.f32 %v2680_v24, %v4636_v1  ;;  %v2067_v7 = vpop.f32.mrb[5].mxu0 }
 0x229   : > { %v2189_v10 = vmul.f32 %v4636_v1, %v2067_v7  ;;  %v2681_v43 = vpop.f32.mrb[6].mxu0 }
 0x22a   : > { %v2230_v39 = vadd.f32 %v4641_v12, %v2191_v40  ;;  %v2192_v4 = vmul.f32 %v2681_v43, %v4636_v1  ;;  %v2070_v19 = vpop.f32.mrb[7].mxu0  ;;  %v2696_v52 = vpop.f32.mrb[4].mxu1 }
 0x22b   : > { %v2228_v57 = vadd.f32 %v4641_v12, %v2189_v10  ;;  %v2190_v50 = vmul.f32 %v4636_v1, %v2070_v19  ;;  %v2207_v62 = vmul.f32 %v2696_v52, %v4636_v1  ;;  %v2131_v16 = vpop.f32.mrb[5].mxu1 }
 0x22c   : > { %v2544_v27 = vpack.c.bf16 %v2230_v39, %v2230_v39  ;;  %v2231_v11 = vadd.f32 %v4641_v12, %v2192_v4  ;;  %v2205_v23 = vmul.f32 %v4636_v1, %v2131_v16  ;;  %v2697_v51 = vpop.f32.mrb[6].mxu1 }
 0x22d   : > { %v2542_v42 = vpack.c.bf16 %v2228_v57, %v2228_v57  ;;  %v2229_v15 = vadd.f32 %v4641_v12, %v2190_v50  ;;  %v2246_v5 = vadd.f32 %v4641_v12, %v2207_v62  ;;  %v2208_v49 = vmul.f32 %v2697_v51, %v4636_v1  ;;  %v2134_v29 = vpop.f32.mrb[7].mxu1 }
 0x22e   : > { %2391 = vst.msk [vmem:[%s4654_s19 + $0x18] sm:$0xf] %vm2384_vm11, %v2544_v27  ;;  %v2545_v34 = vpack.c.bf16 %v2231_v11, %v2231_v11  ;;  %v2244_v17 = vadd.f32 %v4641_v12, %v2205_v23  ;;  %v2206_v21 = vmul.f32 %v4636_v1, %v2134_v29 }
 0x22f   : > { %2389 = vst.msk [vmem:[%s4654_s19 + $0x10] sm:$0xf] %vm2384_vm11, %v2542_v42  ;;  %v2543_v44 = vpack.c.bf16 %v2229_v15, %v2229_v15  ;;  %v2560_v2 = vpack.c.bf16 %v2246_v5, %v2246_v5  ;;  %v2247_v9 = vadd.f32 %v4641_v12, %v2208_v49 }
 0x230   : > { %2392 = vst.msk [vmem:[%s4654_s19 + $0x1c] sm:$0xf] %vm2384_vm11, %v2545_v34  ;;  %v2558_v56 = vpack.c.bf16 %v2244_v17, %v2244_v17  ;;  %v2245_v63 = vadd.f32 %v4641_v12, %v2206_v21 }
 0x231   : > { %2390 = vst.msk [vmem:[%s4654_s19 + $0x14] sm:$0xf] %vm2384_vm11, %v2543_v44  ;;  %2407 = vst.msk [vmem:[%s4654_s19 + $0x58] sm:$0xf] %vm2384_vm11, %v2560_v2  ;;  %v2561_v60 = vpack.c.bf16 %v2247_v9, %v2247_v9 }
 0x232   : > { %2405 = vst.msk [vmem:[%s4654_s19 + $0x50] sm:$0xf] %vm2384_vm11, %v2558_v56  ;;  %v2559_v41 = vpack.c.bf16 %v2245_v63, %v2245_v63 }
 0x233   : > { %2408 = vst.msk [vmem:[%s4654_s19 + $0x5c] sm:$0xf] %vm2384_vm11, %v2561_v60 }
 0x234   : > { %2406 = vst.msk [vmem:[%s4654_s19 + $0x54] sm:$0xf] %vm2384_vm11, %v2559_v41 }
 0x24f   : > { %v2684_v30 = vpop.f32.mrb[8].mxu0 }
 0x250   : > { %v2195_v14 = vmul.f32 %v2684_v30, %v4636_v1  ;;  %v2083_v31 = vpop.f32.mrb[9].mxu0 }
 0x251   : > { %v2193_v48 = vmul.f32 %v4636_v1, %v2083_v31  ;;  %v2685_v58 = vpop.f32.mrb[10].mxu0 }
 0x252   : > { %v2234_v46 = vadd.f32 %v4641_v12, %v2195_v14  ;;  %v2196_v37 = vmul.f32 %v2685_v58, %v4636_v1  ;;  %v2086_v47 = vpop.f32.mrb[11].mxu0  ;;  %v2700_v33 = vpop.f32.mrb[8].mxu1 }
 0x253   : > { %v2232_v6 = vadd.f32 %v4641_v12, %v2193_v48  ;;  %v2194_v20 = vmul.f32 %v4636_v1, %v2086_v47  ;;  %v2211_v59 = vmul.f32 %v2700_v33, %v4636_v1  ;;  %v2147_v0 = vpop.f32.mrb[9].mxu1 }
 0x254   : > { %v2548_v61 = vpack.c.bf16 %v2234_v46, %v2234_v46  ;;  %v2235_v28 = vadd.f32 %v4641_v12, %v2196_v37  ;;  %v2209_v54 = vmul.f32 %v4636_v1, %v2147_v0  ;;  %v2701_v8 = vpop.f32.mrb[10].mxu1 }
 0x255   : > { %v2546_v38 = vpack.c.bf16 %v2232_v6, %v2232_v6  ;;  %v2233_v26 = vadd.f32 %v4641_v12, %v2194_v20  ;;  %v2250_v32 = vadd.f32 %v4641_v12, %v2211_v59  ;;  %v2212_v53 = vmul.f32 %v2701_v8, %v4636_v1  ;;  %v2150_v25 = vpop.f32.mrb[11].mxu1 }
 0x256   : > { %2395 = vst.msk [vmem:[%s4654_s19 + $0x28] sm:$0xf] %vm2384_vm11, %v2548_v61  ;;  %v2549_v13 = vpack.c.bf16 %v2235_v28, %v2235_v28  ;;  %v2248_v55 = vadd.f32 %v4641_v12, %v2209_v54  ;;  %v2210_v22 = vmul.f32 %v4636_v1, %v2150_v25 }
 0x257   : > { %2393 = vst.msk [vmem:[%s4654_s19 + $0x20] sm:$0xf] %vm2384_vm11, %v2546_v38  ;;  %v2547_v36 = vpack.c.bf16 %v2233_v26, %v2233_v26  ;;  %v2564_v18 = vpack.c.bf16 %v2250_v32, %v2250_v32  ;;  %v2251_v45 = vadd.f32 %v4641_v12, %v2212_v53 }
 0x258   : > { %2396 = vst.msk [vmem:[%s4654_s19 + $0x2c] sm:$0xf] %vm2384_vm11, %v2549_v13  ;;  %v2562_v3 = vpack.c.bf16 %v2248_v55, %v2248_v55  ;;  %v2249_v35 = vadd.f32 %v4641_v12, %v2210_v22 }
 0x259   : > { %2394 = vst.msk [vmem:[%s4654_s19 + $0x24] sm:$0xf] %vm2384_vm11, %v2547_v36  ;;  %2411 = vst.msk [vmem:[%s4654_s19 + $0x68] sm:$0xf] %vm2384_vm11, %v2564_v18  ;;  %v2565_v24 = vpack.c.bf16 %v2251_v45, %v2251_v45 }
 0x25a   : > { %2409 = vst.msk [vmem:[%s4654_s19 + $0x60] sm:$0xf] %vm2384_vm11, %v2562_v3  ;;  %v2563_v40 = vpack.c.bf16 %v2249_v35, %v2249_v35 }
 0x25b   : > { %2412 = vst.msk [vmem:[%s4654_s19 + $0x6c] sm:$0xf] %vm2384_vm11, %v2565_v24 }
 0x25c   : > { %2410 = vst.msk [vmem:[%s4654_s19 + $0x64] sm:$0xf] %vm2384_vm11, %v2563_v40 }
 0x277   : > { %v2688_v7 = vpop.f32.mrb[12].mxu0 }
 0x278   : > { %v2199_v10 = vmul.f32 %v2688_v7, %v4636_v1  ;;  %v2099_v43 = vpop.f32.mrb[13].mxu0 }
 0x279   : > { %v2197_v39 = vmul.f32 %v4636_v1, %v2099_v43  ;;  %v2689_v4 = vpop.f32.mrb[14].mxu0 }
 0x27a   : > { %v2238_v19 = vadd.f32 %v4641_v12, %v2199_v10  ;;  %v2200_v52 = vmul.f32 %v2689_v4, %v4636_v1  ;;  %v2102_v57 = vpop.f32.mrb[15].mxu0  ;;  %v2704_v50 = vpop.f32.mrb[12].mxu1 }
 0x27b   : > { %v2236_v62 = vadd.f32 %v4641_v12, %v2197_v39  ;;  %v2198_v16 = vmul.f32 %v4636_v1, %v2102_v57  ;;  %v2215_v27 = vmul.f32 %v2704_v50, %v4636_v1  ;;  %v2163_v11 = vpop.f32.mrb[13].mxu1 }
 0x27c   : > { %v2552_v23 = vpack.c.bf16 %v2238_v19, %v2238_v19  ;;  %v2239_v51 = vadd.f32 %v4641_v12, %v2200_v52  ;;  %v2213_v42 = vmul.f32 %v4636_v1, %v2163_v11  ;;  %v2705_v15 = vpop.f32.mrb[14].mxu1 }
 0x27d   : > { %v2550_v5 = vpack.c.bf16 %v2236_v62, %v2236_v62  ;;  %v2237_v49 = vadd.f32 %v4641_v12, %v2198_v16  ;;  %v2254_v29 = vadd.f32 %v4641_v12, %v2215_v27  ;;  %v2216_v34 = vmul.f32 %v2705_v15, %v4636_v1  ;;  %v2166_v17 = vpop.f32.mrb[15].mxu1 }
 0x27e   : > { %2399 = vst.msk [vmem:[%s4654_s19 + $0x38] sm:$0xf] %vm2384_vm11, %v2552_v23  ;;  %v2553_v21 = vpack.c.bf16 %v2239_v51, %v2239_v51  ;;  %v2252_v44 = vadd.f32 %v4641_v12, %v2213_v42  ;;  %v2214_v2 = vmul.f32 %v4636_v1, %v2166_v17 }
 0x27f   : > { %2397 = vst.msk [vmem:[%s4654_s19 + $0x30] sm:$0xf] %vm2384_vm11, %v2550_v5  ;;  %v2551_v9 = vpack.c.bf16 %v2237_v49, %v2237_v49  ;;  %v2568_v56 = vpack.c.bf16 %v2254_v29, %v2254_v29  ;;  %v2255_v63 = vadd.f32 %v4641_v12, %v2216_v34 }
 0x280   : > { %2400 = vst.msk [vmem:[%s4654_s19 + $0x3c] sm:$0xf] %vm2384_vm11, %v2553_v21  ;;  %v2566_v60 = vpack.c.bf16 %v2252_v44, %v2252_v44  ;;  %v2253_v41 = vadd.f32 %v4641_v12, %v2214_v2 }
 0x281   : > { %2398 = vst.msk [vmem:[%s4654_s19 + $0x34] sm:$0xf] %vm2384_vm11, %v2551_v9  ;;  %2415 = vst.msk [vmem:[%s4654_s19 + $0x78] sm:$0xf] %vm2384_vm11, %v2568_v56  ;;  %v2569_v30 = vpack.c.bf16 %v2255_v63, %v2255_v63 }
 0x282   : > { %2413 = vst.msk [vmem:[%s4654_s19 + $0x70] sm:$0xf] %vm2384_vm11, %v2566_v60  ;;  %v2567_v14 = vpack.c.bf16 %v2253_v41, %v2253_v41 }
 0x283   : > { %2416 = vst.msk [vmem:[%s4654_s19 + $0x7c] sm:$0xf] %vm2384_vm11, %v2569_v30 }
 0x284   : > { %2414 = vst.msk [vmem:[%s4654_s19 + $0x74] sm:$0xf] %vm2384_vm11, %v2567_v14 }
 0x285 PF: > { %s14_s15 = sadd.s32 1, %s3387_s15  }
 0x286   : > { %p11_p4 = scmp.ge.s32.totalorder %s14_s15, 4  }
 0x288   :  { %13 = sbr.rel (!%p11_p4) target bundleno = 1 (0x1), region = 68 }

</bundles_post_ra>
